<compile_context>
chip_gen: v7x
topology: tpu7x:2x2x1
jax: 0.10.0
libtpu: 0.0.40
codegen_flags: <defaults>
</compile_context>

<pallas_src>
import functools

import jax
import jax.numpy as jnp
from jax import lax
from jax.experimental import pallas as pl
from jax.experimental.pallas import tpu as pltpu


# ----------------------------------------------------------------------------
# Fused kernel: conv1 (Toeplitz dots) -> maxpool(3,2)+ReLU (lane-packed)
# -> conv2 (Toeplitz dots) + ReLU -> conv3 (block-diag 1x1 dot).
# One batch tile of NB images per grid step; NB folded into every MXU M dim.
# ----------------------------------------------------------------------------
def _netfcn_kernel(x_ref, t1_ref, b1_ref, t2_ref, b2_ref, w3_ref, b3_ref,
                   o_ref, *, NB, H1, C1, Hp, Ho):
    f32 = jnp.float32
    WC = x_ref.shape[-1]            # W * Cin          (48)
    KH1 = t1_ref.shape[0]           # conv1 kernel height (3)
    KH2 = t2_ref.shape[0]           # conv2 kernel height (4)
    W1C1 = t1_ref.shape[-1]         # W1 * C1          (224)
    WpreC = W1C1 - 2 * C1           # (W1 - 2) * C1    (192)
    WoC2 = t2_ref.shape[-1]         # Wo * C2          (48)

    x = x_ref[...]                                        # (NB, H, W*Cin)

    # ---- conv1: KH1 accumulating block-Toeplitz dots -> (NB*H1, W1*C1) ----
    acc1 = jnp.zeros((NB * H1, W1C1), f32)
    for kh in range(KH1):
        tap = x[:, kh:kh + H1, :].reshape(NB * H1, WC)    # rows = (n, h1)
        acc1 = acc1 + jnp.dot(tap, t1_ref[kh],
                              preferred_element_type=f32)
    a1 = acc1 + b1_ref[...]                               # (NB*H1, 224)

    # ---- MaxPool2d(kernel=3, stride=2) + ReLU, lane-packed ----
    # kw-window max: shifts along W are C1-lane shifts (full-width VPU maxes).
    mw = jnp.maximum(jnp.maximum(a1[:, 0:WpreC],
                                 a1[:, C1:WpreC + C1]),
                     a1[:, 2 * C1:WpreC + 2 * C1])        # (NB*H1, 192)
    mw = mw.reshape(NB, H1, WpreC)
    # kh-window max: shifts along H are row (sublane) shifts.
    Hpre = H1 - 2
    mh = jnp.maximum(jnp.maximum(mw[:, 0:Hpre, :],
                                 mw[:, 1:Hpre + 1, :]),
                     mw[:, 2:Hpre + 2, :])                # (NB, 12, 192)
    # Stride-2 row subsample (minor-preserving reshape) + ReLU.  The stride-2
    # column subsample is folded into the conv2 Toeplitz weight (zero columns
    # for odd w), so no lane gather is needed here.
    ms = mh.reshape(NB, Hp, 2, WpreC)[:, :, 0, :]          # (NB, Hp, 192)
    pr = jnp.maximum(ms, 0.0)

    # ---- conv2: KH2 accumulating Toeplitz dots -> (NB*Ho, Wo*C2) + ReLU ----
    acc2 = jnp.zeros((NB * Ho, WoC2), f32)
    for dh in range(KH2):
        tap = pr[:, dh:dh + Ho, :].reshape(NB * Ho, WpreC)  # rows = (n, ho)
        acc2 = acc2 + jnp.dot(tap, t2_ref[dh],
                              preferred_element_type=f32)
    a2 = jnp.maximum(acc2 + b2_ref[...], 0.0)             # (NB*Ho, 48)

    # ---- conv3 (1x1): block-diagonal epilogue dot -> (NB*Ho, Wo*C3) ----
    a3 = jnp.dot(a2, w3_ref[...], preferred_element_type=f32) + b3_ref[...]
    o_ref[...] = a3.astype(o_ref.dtype)


# ----------------------------------------------------------------------------
# Wrapper: NCHW in / NCHW out, matching the torch module.
# ----------------------------------------------------------------------------
def net_fcn_forward(x_nchw, params, *, batch_tile=None):
    w1, b1, w2, b2, w3, b3 = params                  # HWIO weights
    N, Cin, H, W = x_nchw.shape
    KH1, KW1, _, C1 = w1.shape
    KH2, KW2, _, C2 = w2.shape
    C3 = w3.shape[-1]

    H1, W1 = H - KH1 + 1, W - KW1 + 1                # conv1 output extents
    Hpre, Wpre = H1 - 2, W1 - 2                      # stride-1 3x3 max extents
    Hp, Wp = (H1 - 3) // 2 + 1, (W1 - 3) // 2 + 1    # pool output extents
    if Hpre != 2 * Hp or Wpre != 2 * Wp:
        raise ValueError("pool subsample-by-reshape needs even pre-pool extents")
    Ho, Wo = Hp - KH2 + 1, Wp - KW2 + 1              # conv2/conv3 output

    NB = N if batch_tile is None else batch_tile
    if NB != N:
        if N % NB != 0:
            raise ValueError("batch_tile must divide N")
        if NB % 8 != 0:
            # Output block has NB*Ho sublanes and Wo*C3 (<128) lanes; the
            # (8,128) BlockSpec rule then requires NB*Ho % 8 == 0 -> NB % 8.
            raise ValueError("batch_tile must be a multiple of 8")
    grid = (N // NB,)

    # ---- wrapper-side layout plumbing + tiny Toeplitz weight prep (XLA) ----
    # Raw input streamed as (N, H, W*Cin): dense lanes, no im2col inflation.
    x = jnp.transpose(x_nchw, (0, 2, 3, 1)).reshape(N, H, W * Cin)

    # conv1 block-Toeplitz weights, one (W*Cin, W1*C1) slab per kh tap:
    #   t1[kh, wi*Cin + ci, w*C1 + c] = w1[kh, wi - w, ci, c]  (0 <= wi-w < KW1)
    wi = jnp.arange(W)
    wc1 = jnp.arange(W1)
    kw1 = wi[:, None] - wc1[None, :]
    valid1 = (kw1 >= 0) & (kw1 < KW1)
    t1 = w1[:, jnp.clip(kw1, 0, KW1 - 1), :, :]      # (KH1, W, W1, Cin, C1)
    t1 = jnp.where(valid1[None, :, :, None, None], t1, 0.0)
    t1 = jnp.transpose(t1, (0, 1, 3, 2, 4)).reshape(KH1, W * Cin, W1 * C1)

    # conv2 block-Toeplitz weights with the stride-2 column subsample folded
    # in, one (Wpre*C1, Wo*C2) slab per kh tap:
    #   t2[dh, wp*C1 + ci, wo*C2 + c] = w2[dh, wp//2 - wo, ci, c]
    #     when wp is even and 0 <= wp//2 - wo < KW2, else 0.
    wp = jnp.arange(Wpre)
    wc2 = jnp.arange(Wo)
    dw2 = wp[:, None] // 2 - wc2[None, :]
    valid2 = (wp[:, None] % 2 == 0) & (dw2 >= 0) & (dw2 < KW2)
    t2 = w2[:, jnp.clip(dw2, 0, KW2 - 1), :, :]      # (KH2, Wpre, Wo, C1, C2)
    t2 = jnp.where(valid2[None, :, :, None, None], t2, 0.0)
    t2 = jnp.transpose(t2, (0, 1, 3, 2, 4)).reshape(KH2, Wpre * C1, Wo * C2)

    # conv3 (1x1) as a block-diagonal (Wo*C2, Wo*C3) epilogue weight.
    w3b = jnp.kron(jnp.eye(Wo, dtype=w3.dtype), w3.reshape(C2, C3))

    b1t = jnp.tile(b1, W1).reshape(1, W1 * C1)
    b2t = jnp.tile(b2, Wo).reshape(1, Wo * C2)
    b3t = jnp.tile(b3, Wo).reshape(1, Wo * C3)

    kernel = functools.partial(_netfcn_kernel, NB=NB, H1=H1, C1=C1,
                               Hp=Hp, Ho=Ho)

    out_flat = pl.pallas_call(
        kernel,
        out_shape=jax.ShapeDtypeStruct((N * Ho, Wo * C3), x.dtype),
        grid=grid,
        in_specs=[
            pl.BlockSpec((NB, H, W * Cin), lambda n: (n, 0, 0)),   # raw input
            pl.BlockSpec(t1.shape, lambda n: (0, 0, 0)),           # conv1 Toeplitz
            pl.BlockSpec((1, W1 * C1), lambda n: (0, 0)),          # b1 (tiled)
            pl.BlockSpec(t2.shape, lambda n: (0, 0, 0)),           # conv2 Toeplitz
            pl.BlockSpec((1, Wo * C2), lambda n: (0, 0)),          # b2 (tiled)
            pl.BlockSpec(w3b.shape, lambda n: (0, 0)),             # conv3 blockdiag
            pl.BlockSpec((1, Wo * C3), lambda n: (0, 0)),          # b3 (tiled)
        ],
        out_specs=pl.BlockSpec((NB * Ho, Wo * C3), lambda n: (n, 0)),
        compiler_params=pltpu.CompilerParams(
            dimension_semantics=("parallel",)),
    )(x, t1, b1t, t2, b2t, w3b, b3t)

    out = out_flat.reshape(N, Ho, Wo, C3)             # rows=(n,ho), lanes=(wo,c)
    return jnp.transpose(out, (0, 3, 1, 2))           # NHWC -> NCHW


# ----------------------------------------------------------------------------
# Params (PyTorch-like uniform init, HWIO layout) and pure-JAX reference.
# ----------------------------------------------------------------------------
def init_params(key):
    ks = jax.random.split(key, 6)

    def conv_init(kw_key, kb_key, kh, kw, cin, cout):
        bound = 1.0 / (cin * kh * kw) ** 0.5
        w = jax.random.uniform(kw_key, (kh, kw, cin, cout), jnp.float32,
                               -bound, bound)
        b = jax.random.uniform(kb_key, (cout,), jnp.float32, -bound, bound)
        return w, b

    w1, b1 = conv_init(ks[0], ks[1], 3, 3, 3, 16)
    w2, b2 = conv_init(ks[2], ks[3], 4, 4, 16, 16)
    w3, b3 = conv_init(ks[4], ks[5], 1, 1, 16, 2)
    return (w1, b1, w2, b2, w3, b3)


def reference_forward(x_nchw, params):
    w1, b1, w2, b2, w3, b3 = params

    def conv(x, w, b):
        y = lax.conv_general_dilated(
            x, w, window_strides=(1, 1), padding="VALID",
            dimension_numbers=("NCHW", "HWIO", "NCHW"))
        return y + b.reshape(1, -1, 1, 1)

    x = conv(x_nchw, w1, b1)
    x = lax.reduce_window(x, -jnp.inf, lax.max,
                          (1, 1, 3, 3), (1, 1, 2, 2), "VALID")
    x = jnp.maximum(x, 0.0)
    x = jnp.maximum(conv(x, w2, b2), 0.0)
    x = conv(x, w3, b3)
    return x


if __name__ == "__main__":
    key = jax.random.PRNGKey(0)
    pkey, xkey = jax.random.split(key)
    params = init_params(pkey)

    # NCHW input: 16x16 -> conv1 14x14 -> pool 6x6 -> conv2 3x3 -> conv3 3x3
    x = jax.random.normal(xkey, (2, 3, 16, 16), jnp.float32)

    fwd = jax.jit(net_fcn_forward)
    out = jax.block_until_ready(fwd(x, params))
    ref = jax.block_until_ready(reference_forward(x, params))

    assert out.shape == (2, 2, 3, 3), out.shape
    err = float(jnp.max(jnp.abs(out - ref)))
    assert jnp.allclose(out, ref, rtol=1e-4, atol=1e-4), err
    print("KERNEL_OK")
</pallas_src>

<mosaic_0001>
module attributes {stable_mosaic.version = 11 : i64} {
  func.func @_netfcn_kernel(%arg0: i32, %arg1: memref<2x16x48xf32, #tpu.memory_space<vmem>>, %arg2: memref<3x48x224xf32, #tpu.memory_space<vmem>>, %arg3: memref<1x224xf32, #tpu.memory_space<vmem>>, %arg4: memref<4x192x48xf32, #tpu.memory_space<vmem>>, %arg5: memref<1x48xf32, #tpu.memory_space<vmem>>, %arg6: memref<48x6xf32, #tpu.memory_space<vmem>>, %arg7: memref<1x6xf32, #tpu.memory_space<vmem>>, %arg8: memref<6x6xf32, #tpu.memory_space<vmem>>) attributes {dimension_semantics = [#tpu.dimension_semantics<parallel>], iteration_bounds = array<i64: 1>, scalar_prefetch = 0 : i64, scratch_operands = 0 : i64, tpu.core_type = #tpu.core_type<tc>, window_params = [{transform_indices = @transform_0, window_bounds = array<i64: 2, 16, 48>}, {pipeline_mode = #tpu.pipeline_mode<synchronous>, transform_indices = @transform_1, window_bounds = array<i64: 3, 48, 224>}, {pipeline_mode = #tpu.pipeline_mode<synchronous>, transform_indices = @transform_2, window_bounds = array<i64: 1, 224>}, {pipeline_mode = #tpu.pipeline_mode<synchronous>, transform_indices = @transform_3, window_bounds = array<i64: 4, 192, 48>}, {pipeline_mode = #tpu.pipeline_mode<synchronous>, transform_indices = @transform_4, window_bounds = array<i64: 1, 48>}, {pipeline_mode = #tpu.pipeline_mode<synchronous>, transform_indices = @transform_5, window_bounds = array<i64: 48, 6>}, {pipeline_mode = #tpu.pipeline_mode<synchronous>, transform_indices = @transform_6, window_bounds = array<i64: 1, 6>}, {transform_indices = @transform_7, window_bounds = array<i64: 6, 6>}]} {
    %c0 = arith.constant 0 : index
    %c0_0 = arith.constant 0 : index
    %c0_1 = arith.constant 0 : index
    %0 = vector.load %arg1[%c0, %c0_0, %c0_1] : memref<2x16x48xf32, #tpu.memory_space<vmem>>, vector<2x16x48xf32>
    %cst = arith.constant 0.000000e+00 : f32
    %1 = vector.broadcast %cst : f32 to vector<28x224xf32>
    %2 = vector.extract_strided_slice %0 {offsets = [0, 0, 0], sizes = [2, 14, 48], strides = [1, 1, 1]} : vector<2x16x48xf32> to vector<2x14x48xf32>
    %3 = vector.shape_cast %2 : vector<2x14x48xf32> to vector<28x48xf32>
    %c0_2 = arith.constant 0 : index
    %c0_3 = arith.constant 0 : index
    %c0_4 = arith.constant 0 : index
    %4 = vector.load %arg2[%c0_2, %c0_3, %c0_4] : memref<3x48x224xf32, #tpu.memory_space<vmem>>, vector<1x48x224xf32>
    %5 = vector.shape_cast %4 : vector<1x48x224xf32> to vector<48x224xf32>
    %cst_5 = arith.constant dense<0.000000e+00> : vector<28x224xf32>
    %6 = tpu.matmul %3, %5, %cst_5 {dimension_numbers = #tpu.dot_dimension_numbers<[1], [0], [0], [1], [0, 0, 1, 1], [], []>} : vector<28x48xf32>, vector<48x224xf32>, vector<28x224xf32> -> vector<28x224xf32>
    %7 = arith.addf %1, %6 : vector<28x224xf32>
    %8 = vector.extract_strided_slice %0 {offsets = [0, 1, 0], sizes = [2, 14, 48], strides = [1, 1, 1]} : vector<2x16x48xf32> to vector<2x14x48xf32>
    %9 = vector.shape_cast %8 : vector<2x14x48xf32> to vector<28x48xf32>
    %c1 = arith.constant 1 : index
    %c0_6 = arith.constant 0 : index
    %c0_7 = arith.constant 0 : index
    %10 = vector.load %arg2[%c1, %c0_6, %c0_7] : memref<3x48x224xf32, #tpu.memory_space<vmem>>, vector<1x48x224xf32>
    %11 = vector.shape_cast %10 : vector<1x48x224xf32> to vector<48x224xf32>
    %cst_8 = arith.constant dense<0.000000e+00> : vector<28x224xf32>
    %12 = tpu.matmul %9, %11, %cst_8 {dimension_numbers = #tpu.dot_dimension_numbers<[1], [0], [0], [1], [0, 0, 1, 1], [], []>} : vector<28x48xf32>, vector<48x224xf32>, vector<28x224xf32> -> vector<28x224xf32>
    %13 = arith.addf %7, %12 : vector<28x224xf32>
    %14 = vector.extract_strided_slice %0 {offsets = [0, 2, 0], sizes = [2, 14, 48], strides = [1, 1, 1]} : vector<2x16x48xf32> to vector<2x14x48xf32>
    %15 = vector.shape_cast %14 : vector<2x14x48xf32> to vector<28x48xf32>
    %c2 = arith.constant 2 : index
    %c0_9 = arith.constant 0 : index
    %c0_10 = arith.constant 0 : index
    %16 = vector.load %arg2[%c2, %c0_9, %c0_10] : memref<3x48x224xf32, #tpu.memory_space<vmem>>, vector<1x48x224xf32>
    %17 = vector.shape_cast %16 : vector<1x48x224xf32> to vector<48x224xf32>
    %cst_11 = arith.constant dense<0.000000e+00> : vector<28x224xf32>
    %18 = tpu.matmul %15, %17, %cst_11 {dimension_numbers = #tpu.dot_dimension_numbers<[1], [0], [0], [1], [0, 0, 1, 1], [], []>} : vector<28x48xf32>, vector<48x224xf32>, vector<28x224xf32> -> vector<28x224xf32>
    %19 = arith.addf %13, %18 : vector<28x224xf32>
    %c0_12 = arith.constant 0 : index
    %c0_13 = arith.constant 0 : index
    %20 = vector.load %arg3[%c0_12, %c0_13] : memref<1x224xf32, #tpu.memory_space<vmem>>, vector<1x224xf32>
    %21 = vector.broadcast %20 : vector<1x224xf32> to vector<28x224xf32>
    %22 = arith.addf %19, %21 : vector<28x224xf32>
    %23 = vector.extract_strided_slice %22 {offsets = [0, 0], sizes = [28, 192], strides = [1, 1]} : vector<28x224xf32> to vector<28x192xf32>
    %24 = vector.extract_strided_slice %22 {offsets = [0, 16], sizes = [28, 192], strides = [1, 1]} : vector<28x224xf32> to vector<28x192xf32>
    %25 = arith.maximumf %23, %24 : vector<28x192xf32>
    %26 = vector.extract_strided_slice %22 {offsets = [0, 32], sizes = [28, 192], strides = [1, 1]} : vector<28x224xf32> to vector<28x192xf32>
    %27 = arith.maximumf %25, %26 : vector<28x192xf32>
    %28 = vector.shape_cast %27 : vector<28x192xf32> to vector<2x14x192xf32>
    %29 = vector.extract_strided_slice %28 {offsets = [0, 0, 0], sizes = [2, 12, 192], strides = [1, 1, 1]} : vector<2x14x192xf32> to vector<2x12x192xf32>
    %30 = vector.extract_strided_slice %28 {offsets = [0, 1, 0], sizes = [2, 12, 192], strides = [1, 1, 1]} : vector<2x14x192xf32> to vector<2x12x192xf32>
    %31 = arith.maximumf %29, %30 : vector<2x12x192xf32>
    %32 = vector.extract_strided_slice %28 {offsets = [0, 2, 0], sizes = [2, 12, 192], strides = [1, 1, 1]} : vector<2x14x192xf32> to vector<2x12x192xf32>
    %33 = arith.maximumf %31, %32 : vector<2x12x192xf32>
    %34 = vector.shape_cast %33 : vector<2x12x192xf32> to vector<2x6x2x192xf32>
    %35 = vector.extract_strided_slice %34 {offsets = [0, 0, 0, 0], sizes = [2, 6, 1, 192], strides = [1, 1, 1, 1]} : vector<2x6x2x192xf32> to vector<2x6x1x192xf32>
    %36 = vector.shape_cast %35 : vector<2x6x1x192xf32> to vector<2x6x192xf32>
    %cst_14 = arith.constant 0.000000e+00 : f32
    %37 = vector.broadcast %cst_14 : f32 to vector<2x6x192xf32>
    %38 = arith.maximumf %36, %37 : vector<2x6x192xf32>
    %cst_15 = arith.constant 0.000000e+00 : f32
    %39 = vector.broadcast %cst_15 : f32 to vector<6x48xf32>
    %40 = vector.extract_strided_slice %38 {offsets = [0, 0, 0], sizes = [2, 3, 192], strides = [1, 1, 1]} : vector<2x6x192xf32> to vector<2x3x192xf32>
    %41 = vector.shape_cast %40 : vector<2x3x192xf32> to vector<6x192xf32>
    %c0_16 = arith.constant 0 : index
    %c0_17 = arith.constant 0 : index
    %c0_18 = arith.constant 0 : index
    %42 = vector.load %arg4[%c0_16, %c0_17, %c0_18] : memref<4x192x48xf32, #tpu.memory_space<vmem>>, vector<1x192x48xf32>
    %43 = vector.shape_cast %42 : vector<1x192x48xf32> to vector<192x48xf32>
    %cst_19 = arith.constant dense<0.000000e+00> : vector<6x48xf32>
    %44 = tpu.matmul %41, %43, %cst_19 {dimension_numbers = #tpu.dot_dimension_numbers<[1], [0], [0], [1], [0, 0, 1, 1], [], []>} : vector<6x192xf32>, vector<192x48xf32>, vector<6x48xf32> -> vector<6x48xf32>
    %45 = arith.addf %39, %44 : vector<6x48xf32>
    %46 = vector.extract_strided_slice %38 {offsets = [0, 1, 0], sizes = [2, 3, 192], strides = [1, 1, 1]} : vector<2x6x192xf32> to vector<2x3x192xf32>
    %47 = vector.shape_cast %46 : vector<2x3x192xf32> to vector<6x192xf32>
    %c1_20 = arith.constant 1 : index
    %c0_21 = arith.constant 0 : index
    %c0_22 = arith.constant 0 : index
    %48 = vector.load %arg4[%c1_20, %c0_21, %c0_22] : memref<4x192x48xf32, #tpu.memory_space<vmem>>, vector<1x192x48xf32>
    %49 = vector.shape_cast %48 : vector<1x192x48xf32> to vector<192x48xf32>
    %cst_23 = arith.constant dense<0.000000e+00> : vector<6x48xf32>
    %50 = tpu.matmul %47, %49, %cst_23 {dimension_numbers = #tpu.dot_dimension_numbers<[1], [0], [0], [1], [0, 0, 1, 1], [], []>} : vector<6x192xf32>, vector<192x48xf32>, vector<6x48xf32> -> vector<6x48xf32>
    %51 = arith.addf %45, %50 : vector<6x48xf32>
    %52 = vector.extract_strided_slice %38 {offsets = [0, 2, 0], sizes = [2, 3, 192], strides = [1, 1, 1]} : vector<2x6x192xf32> to vector<2x3x192xf32>
    %53 = vector.shape_cast %52 : vector<2x3x192xf32> to vector<6x192xf32>
    %c2_24 = arith.constant 2 : index
    %c0_25 = arith.constant 0 : index
    %c0_26 = arith.constant 0 : index
    %54 = vector.load %arg4[%c2_24, %c0_25, %c0_26] : memref<4x192x48xf32, #tpu.memory_space<vmem>>, vector<1x192x48xf32>
    %55 = vector.shape_cast %54 : vector<1x192x48xf32> to vector<192x48xf32>
    %cst_27 = arith.constant dense<0.000000e+00> : vector<6x48xf32>
    %56 = tpu.matmul %53, %55, %cst_27 {dimension_numbers = #tpu.dot_dimension_numbers<[1], [0], [0], [1], [0, 0, 1, 1], [], []>} : vector<6x192xf32>, vector<192x48xf32>, vector<6x48xf32> -> vector<6x48xf32>
    %57 = arith.addf %51, %56 : vector<6x48xf32>
    %58 = vector.extract_strided_slice %38 {offsets = [0, 3, 0], sizes = [2, 3, 192], strides = [1, 1, 1]} : vector<2x6x192xf32> to vector<2x3x192xf32>
    %59 = vector.shape_cast %58 : vector<2x3x192xf32> to vector<6x192xf32>
    %c3 = arith.constant 3 : index
    %c0_28 = arith.constant 0 : index
    %c0_29 = arith.constant 0 : index
    %60 = vector.load %arg4[%c3, %c0_28, %c0_29] : memref<4x192x48xf32, #tpu.memory_space<vmem>>, vector<1x192x48xf32>
    %61 = vector.shape_cast %60 : vector<1x192x48xf32> to vector<192x48xf32>
    %cst_30 = arith.constant dense<0.000000e+00> : vector<6x48xf32>
    %62 = tpu.matmul %59, %61, %cst_30 {dimension_numbers = #tpu.dot_dimension_numbers<[1], [0], [0], [1], [0, 0, 1, 1], [], []>} : vector<6x192xf32>, vector<192x48xf32>, vector<6x48xf32> -> vector<6x48xf32>
    %63 = arith.addf %57, %62 : vector<6x48xf32>
    %c0_31 = arith.constant 0 : index
    %c0_32 = arith.constant 0 : index
    %64 = vector.load %arg5[%c0_31, %c0_32] : memref<1x48xf32, #tpu.memory_space<vmem>>, vector<1x48xf32>
    %65 = vector.broadcast %64 : vector<1x48xf32> to vector<6x48xf32>
    %66 = arith.addf %63, %65 : vector<6x48xf32>
    %cst_33 = arith.constant 0.000000e+00 : f32
    %67 = vector.broadcast %cst_33 : f32 to vector<6x48xf32>
    %68 = arith.maximumf %66, %67 : vector<6x48xf32>
    %c0_34 = arith.constant 0 : index
    %c0_35 = arith.constant 0 : index
    %69 = vector.load %arg6[%c0_34, %c0_35] : memref<48x6xf32, #tpu.memory_space<vmem>>, vector<48x6xf32>
    %cst_36 = arith.constant dense<0.000000e+00> : vector<6x6xf32>
    %70 = tpu.matmul %68, %69, %cst_36 {dimension_numbers = #tpu.dot_dimension_numbers<[1], [0], [0], [1], [0, 0, 1, 1], [], []>} : vector<6x48xf32>, vector<48x6xf32>, vector<6x6xf32> -> vector<6x6xf32>
    %c0_37 = arith.constant 0 : index
    %c0_38 = arith.constant 0 : index
    %71 = vector.load %arg7[%c0_37, %c0_38] : memref<1x6xf32, #tpu.memory_space<vmem>>, vector<1x6xf32>
    %72 = vector.broadcast %71 : vector<1x6xf32> to vector<6x6xf32>
    %73 = arith.addf %70, %72 : vector<6x6xf32>
    %c0_39 = arith.constant 0 : index
    %c0_40 = arith.constant 0 : index
    %74 = vector.load %arg8[%c0_39, %c0_40] : memref<6x6xf32, #tpu.memory_space<vmem>>, vector<6x6xf32>
    tpu.vector_store %arg8[%c0_39, %c0_40], %73 {strides = array<i32>} : memref<6x6xf32, #tpu.memory_space<vmem>>, vector<6x6xf32>,
    return
  }
  func.func @transform_0(%arg0: i32) -> (i32, i32, i32) {
    %c0_i32 = arith.constant 0 : i32
    %c0_i32_0 = arith.constant 0 : i32
    %c0_i32_1 = arith.constant 0 : i32
    return %arg0, %c0_i32, %c0_i32_0 : i32, i32, i32
  }
  func.func @transform_1(%arg0: i32) -> (i32, i32, i32) {
    %c0_i32 = arith.constant 0 : i32
    %c0_i32_0 = arith.constant 0 : i32
    %c0_i32_1 = arith.constant 0 : i32
    %c0_i32_2 = arith.constant 0 : i32
    return %c0_i32, %c0_i32_0, %c0_i32_1 : i32, i32, i32
  }
  func.func @transform_2(%arg0: i32) -> (i32, i32) {
    %c0_i32 = arith.constant 0 : i32
    %c0_i32_0 = arith.constant 0 : i32
    %c0_i32_1 = arith.constant 0 : i32
    return %c0_i32, %c0_i32_0 : i32, i32
  }
  func.func @transform_3(%arg0: i32) -> (i32, i32, i32) {
    %c0_i32 = arith.constant 0 : i32
    %c0_i32_0 = arith.constant 0 : i32
    %c0_i32_1 = arith.constant 0 : i32
    %c0_i32_2 = arith.constant 0 : i32
    return %c0_i32, %c0_i32_0, %c0_i32_1 : i32, i32, i32
  }
  func.func @transform_4(%arg0: i32) -> (i32, i32) {
    %c0_i32 = arith.constant 0 : i32
    %c0_i32_0 = arith.constant 0 : i32
    %c0_i32_1 = arith.constant 0 : i32
    return %c0_i32, %c0_i32_0 : i32, i32
  }
  func.func @transform_5(%arg0: i32) -> (i32, i32) {
    %c0_i32 = arith.constant 0 : i32
    %c0_i32_0 = arith.constant 0 : i32
    %c0_i32_1 = arith.constant 0 : i32
    return %c0_i32, %c0_i32_0 : i32, i32
  }
  func.func @transform_6(%arg0: i32) -> (i32, i32) {
    %c0_i32 = arith.constant 0 : i32
    %c0_i32_0 = arith.constant 0 : i32
    %c0_i32_1 = arith.constant 0 : i32
    return %c0_i32, %c0_i32_0 : i32, i32
  }
  func.func @transform_7(%arg0: i32) -> (i32, i32) {
    %c0_i32 = arith.constant 0 : i32
    %c0_i32_0 = arith.constant 0 : i32
    return %arg0, %c0_i32 : i32, i32
  }
}

</mosaic_0001>

<bundles_post_ra>
// kernel: tile.18
= control target key start
LH: loop header
LB: loop body
LE: loop exit
PB: predicated region body
PF: predicated region fallthrough
CT: control target
= control target key end

     0   :  { %s28_s0 = inlined_call_operand.vmem [shape: f32[16], index: 0, kind: input, shape index: {}]   ;;  %s29_s1 = inlined_call_operand.vmem [shape: f32[14,16], index: 1, kind: output, shape index: {}]  }
   0x1   :  { %v4_v0 = vld [vmem:[%s28_s0] ss:$0 sm:$0xff] }
   0x2   :  { %5 = vst [vmem:[%s29_s1] sm:$0xff] %v4_v0  ;;  %8 = vst [vmem:[%s29_s1 + $0x8] sm:$0xff] %v4_v0 }

// kernel: tile.19
= control target key start
LH: loop header
LB: loop body
LE: loop exit
PB: predicated region body
PF: predicated region fallthrough
CT: control target
= control target key end

     0   :  { %s19_s8 = smov 3  ;;  %s79_s9 = smov 112   ;;  %vm4_vm0 = vcmask 130048   ;;  %vm10_vm1 = vcmask 1048448   ;;  %vm16_vm2 = vcmask 917248   ;;  %vm23_vm3 = vcmask 786048   ;;  %s126_s0 = inlined_call_operand.vmem [shape: f32[14,16], index: 0, kind: input, shape index: {}]   ;;  %s127_s1 = inlined_call_operand.vmem [shape: f32[1,224], index: 1, kind: output, shape index: {}]  }
   0x1   :  { %v64_v0 = vld [vmem:[%s126_s0 + $0x7] sm:$0x1]   ;;  %v66_v1 = vld [vmem:[%s126_s0 + $0x5] ss:$8 sm:%s19_s8]   ;;  %s80_s12 = smov 80   ;;  %s26_s15 = smov 3 }
   0x2   :  { %8 = vrot.lane.b32.xlu0 %v64_v0, %s79_s9  ;;  %21 = vrot.lane.b32.xlu1 %v66_v1, %s80_s12  ;;  %v65_v2 = vld [vmem:[%s126_s0 + $0x6] sm:$0x1]   ;;  %s33_s18 = smov 3  ;;  %s40_s19 = smov 3  ;;  %vm30_vm4 = vcmask 654848   ;;  %vm37_vm5 = vcmask 523648  }
   0x3   :  { %v67_v3 = vld [vmem:[%s126_s0 + $0x4] ss:$8 sm:%s26_s15]   ;;  %s81_s20 = smov 96   ;;  %s82_s21 = smov 64   ;;  %v68_v4 = vld [vmem:[%s126_s0 + $0x3] ss:$8 sm:%s33_s18]  }
   0x4   :  { %s2_s24 = smov 3  ;;  %v69_v5 = vld [vmem:[%s126_s0 + $0x2] ss:$8 sm:%s40_s19]   ;;  %s47_s27 = smov 3  ;;  %vm44_vm6 = vcmask 392448   ;;  %vm51_vm7 = vcmask 261248  }
   0x5   :  { %v3_v6 = vld [vmem:[%s126_s0] ss:$8 sm:%s2_s24]   ;;  %s83_s30 = smov 48   ;;  %s84_s2 = smov 32   ;;  %v70_v7 = vld [vmem:[%s126_s0 + $0x1] ss:$8 sm:%s47_s27]  }
   0x6   :  { %14 = vrot.lane.b32.xlu0 %v65_v2, %s81_s20  ;;  %28 = vrot.lane.b32.xlu1 %v67_v3, %s82_s21  ;;  %5 = vst.msk [vmem:[#allocation0] ss:$8 sm:$0x3] %vm4_vm0, %v3_v6   ;;  %s85_s0 = smov 16  }
   0xa   :  { %35 = vrot.lane.b32.xlu0 %v68_v4, %s83_s30  ;;  %42 = vrot.lane.b32.xlu1 %v69_v5, %s84_s2 }
   0xe   :  { %49 = vrot.lane.b32.xlu0 %v70_v7, %s85_s0 }
  0x74   :  { %v9_v8 = vpop.permute.xlu0 %8   ;;  %v22_v9 = vpop.permute.xlu1 %21  }
  0x75   :  { %11 = vst.msk [vmem:[#allocation0] sm:$0x1] %vm10_vm1, %v9_v8  }
  0x78   :  { %v15_v10 = vpop.permute.xlu0 %14   ;;  %v29_v11 = vpop.permute.xlu1 %28  }
  0x79   :  { %17 = vst.msk [vmem:[#allocation0] sm:$0x1] %vm16_vm2, %v15_v10  }
  0x7a   :  { %24 = vst.msk [vmem:[#allocation0] ss:$8 sm:$0x3] %vm23_vm3, %v22_v9  }
  0x7b   :  { %31 = vst.msk [vmem:[#allocation0] ss:$8 sm:$0x3] %vm30_vm4, %v29_v11  }
  0x7c   :  { %v36_v12 = vpop.permute.xlu0 %35   ;;  %v43_v13 = vpop.permute.xlu1 %42  }
  0x7d   :  { %38 = vst.msk [vmem:[#allocation0] ss:$8 sm:$0x3] %vm37_vm5, %v36_v12  }
  0x7e   :  { %45 = vst.msk [vmem:[#allocation0] ss:$8 sm:$0x3] %vm44_vm6, %v43_v13  }
  0x80   :  { %v50_v14 = vpop.permute.xlu0 %49  }
  0x81   :  { %52 = vst.msk [vmem:[#allocation0] ss:$8 sm:$0x3] %vm51_vm7, %v50_v14  }
  0x88   :  { %v56_v15 = vld [vmem:[#allocation0] sm:$0x1]  ;;  %v60_v16 = vld [vmem:[#allocation0 + $0x8] sm:$0x1] }
  0x89   :  { %58 = vst [vmem:[%s127_s1] sm:$0x1] %v56_v15  ;;  %71 = vst [vmem:[%s127_s1 + $0x1] sm:$0x1] %v60_v16 }

// kernel: tile.23
= control target key start
LH: loop header
LB: loop body
LE: loop exit
PB: predicated region body
PF: predicated region fallthrough
CT: control target
= control target key end

     0   :  { %s22_s0 = inlined_call_operand.vmem [shape: f32[16], index: 0, kind: input, shape index: {}]   ;;  %s23_s1 = inlined_call_operand.vmem [shape: f32[3,16], index: 1, kind: output, shape index: {}]  }
   0x1   :  { %v4_v0 = vld [vmem:[%s22_s0] ss:$0 sm:$0xff] }
   0x2   :  { %5 = vst [vmem:[%s23_s1] sm:$0xf] %v4_v0 }

// kernel: tile.24
= control target key start
LH: loop header
LB: loop body
LE: loop exit
PB: predicated region body
PF: predicated region fallthrough
CT: control target
= control target key end

     0   :  { %vm7_vm0 = vcmask 130048   ;;  %s30_s8 = smov 16   ;;  %vm13_vm1 = vcmask 392448   ;;  %vm19_vm2 = vcmask 261248   ;;  %s47_s0 = inlined_call_operand.vmem [shape: f32[3,16], index: 0, kind: input, shape index: {}]   ;;  %s48_s1 = inlined_call_operand.vmem [shape: f32[1,48], index: 1, kind: output, shape index: {}]  }
   0x1   :  { %v4_v0 = vld [vmem:[%s47_s0] sm:$0xf]  ;;  %s29_s0 = smov 32  }
   0x2   :  { %5 = vst [vmem:[#allocation1] sm:$0xf] %v4_v0 }
   0x9   :  { %v10_v1 = vld [vmem:[#allocation1 + $0x2] sm:$0x1]   ;;  %v6_v2 = vld [vmem:[#allocation1] sm:$0x1]   ;;  %v16_v3 = vld [vmem:[#allocation1 + $0x1] sm:$0x1]  }
   0xa   :  { %11 = vrot.lane.b32.xlu0 %v10_v1, %s29_s0  ;;  %8 = vst.msk [vmem:[#allocation0] sm:$0x1] %vm7_vm0, %v6_v2  }
   0xe   :  { %17 = vrot.lane.b32.xlu0 %v16_v3, %s30_s8 }
  0x7c   :  { %v12_v4 = vpop.permute.xlu0 %11  }
  0x7d   :  { %14 = vst.msk [vmem:[#allocation0] sm:$0x1] %vm13_vm1, %v12_v4  }
  0x80   :  { %v18_v5 = vpop.permute.xlu0 %17  }
  0x81   :  { %20 = vst.msk [vmem:[#allocation0] sm:$0x1] %vm19_vm2, %v18_v5  }
  0x88   :  { %v24_v6 = vld [vmem:[#allocation0] sm:$0x1] }
  0x89   :  { %26 = vst [vmem:[%s48_s1] sm:$0x1] %v24_v6 }

// kernel: tile.28
= control target key start
LH: loop header
LB: loop body
LE: loop exit
PB: predicated region body
PF: predicated region fallthrough
CT: control target
= control target key end

     0   :  { %s22_s0 = inlined_call_operand.vmem [shape: f32[2], index: 0, kind: input, shape index: {}]   ;;  %s23_s1 = inlined_call_operand.vmem [shape: f32[3,2], index: 1, kind: output, shape index: {}]  }
   0x1   :  { %v4_v0 = vld [vmem:[%s22_s0] ss:$0 sm:$0xff] }
   0x2   :  { %5 = vst [vmem:[%s23_s1] sm:$0xf] %v4_v0 }

// kernel: tile.29
= control target key start
LH: loop header
LB: loop body
LE: loop exit
PB: predicated region body
PF: predicated region fallthrough
CT: control target
= control target key end

     0   :  { %vm7_vm0 = vcmask 15360   ;;  %s30_s8 = smov 2   ;;  %vm13_vm1 = vcmask 48160   ;;  %vm19_vm2 = vcmask 31760   ;;  %s47_s0 = inlined_call_operand.vmem [shape: f32[3,2], index: 0, kind: input, shape index: {}]   ;;  %s48_s1 = inlined_call_operand.vmem [shape: f32[1,6], index: 1, kind: output, shape index: {}]  }
   0x1   :  { %v4_v0 = vld [vmem:[%s47_s0] sm:$0xf]  ;;  %s29_s0 = smov 4  }
   0x2   :  { %5 = vst [vmem:[#allocation1] sm:$0xf] %v4_v0 }
   0x9   :  { %v10_v1 = vld [vmem:[#allocation1 + $0x2] sm:$0x1]   ;;  %v6_v2 = vld [vmem:[#allocation1] sm:$0x1]   ;;  %v16_v3 = vld [vmem:[#allocation1 + $0x1] sm:$0x1]  }
   0xa   :  { %11 = vrot.lane.b32.xlu0 %v10_v1, %s29_s0  ;;  %8 = vst.msk [vmem:[#allocation0] sm:$0x1] %vm7_vm0, %v6_v2  }
   0xe   :  { %17 = vrot.lane.b32.xlu0 %v16_v3, %s30_s8 }
  0x7c   :  { %v12_v4 = vpop.permute.xlu0 %11  }
  0x7d   :  { %14 = vst.msk [vmem:[#allocation0] sm:$0x1] %vm13_vm1, %v12_v4  }
  0x80   :  { %v18_v5 = vpop.permute.xlu0 %17  }
  0x81   :  { %20 = vst.msk [vmem:[#allocation0] sm:$0x1] %vm19_vm2, %v18_v5  }
  0x88   :  { %v24_v6 = vld [vmem:[#allocation0] sm:$0x1] }
  0x89   :  { %26 = vst [vmem:[%s48_s1] sm:$0x1] %v24_v6 }

// kernel: net_fcn_forward.1
= control target key start
LH: loop header
LB: loop body
LE: loop exit
PB: predicated region body
PF: predicated region fallthrough
CT: control target
= control target key end

     0   :  { %v38_v0 = vlaneseq  ;;  %v1944_v4 = vmov 0.0   ;;  %v1945_v5 = vmov 1983009808   ;;  %vm114_vm0 = vcmask 1040384   ;;  %s1947_s25 = smov 96   ;;  %s1948_s26 = smov 112   ;;  %s3018_s1 = inlined_call_operand.vmem [shape: f32[3,48,224], index: 1, kind: input, shape index: {}]   ;;  %s3019_s0 = inlined_call_operand.vmem [shape: f32[2,16,48], index: 0, kind: input, shape index: {}]   ;;  %s3020_s3 = inlined_call_operand.vmem [shape: f32[4,192,48], index: 3, kind: input, shape index: {}]   ;;  %s3021_s2 = inlined_call_operand.vmem [shape: f32[1,224], index: 2, kind: input, shape index: {}]   ;;  %s3022_s5 = inlined_call_operand.vmem [shape: f32[48,6], index: 5, kind: input, shape index: {}]   ;;  %s3023_s4 = inlined_call_operand.vmem [shape: f32[1,48], index: 4, kind: input, shape index: {}]   ;;  %s3024_s6 = inlined_call_operand.vmem [shape: f32[1,6], index: 6, kind: input, shape index: {}]   ;;  %s3025_s7 = inlined_call_operand.vmem [shape: f32[6,6], index: 7, kind: output, shape index: {}]  }
   0x1   :  { %v101_v1 = vld [vmem:[%s3018_s1 + $0x8] sm:$0xff]  ;;  %v103_v2 = vld [vmem:[%s3018_s1 + $0x18] sm:$0xff]  ;;  %v100_v3 = vld [vmem:[%s3018_s1] sm:$0xff]  ;;  %466 = vmatprep.mubr.f32.mxu0 %v1944_v4  ;;  %v36_v6 = vunpack.c.l.s4 %v1945_v5  ;;  %310 = vmatprep.mubr.f32.mxu1 %v1944_v4  ;;  %vm115_vm1 = vcmask 1042434   ;;  %vm117_vm2 = vcmask 1044484   ;;  %vm237_vm3 = vcmask 392192  }
   0x2   :  { %v1741_v7 = vpack.c.bf16 %v103_v2, %v101_v1  ;;  %v102_v8 = vld [vmem:[%s3018_s1 + $0x10] sm:$0xff]  ;;  %v105_v9 = vld [vmem:[%s3018_s1 + $0x28] sm:$0xff]  ;;  %v107_v10 = vld [vmem:[%s3018_s1 + $0x38] sm:$0xff]  ;;  %v2010_v11 = vshrl.u32 %v38_v0, 7  ;;  %vm119_vm4 = vcmask 1046534   ;;  %vm712_vm8 = vcmask 916480  }
   0x3   :  { %v1743_v12 = vpack.c.bf16 %v102_v8, %v100_v3  ;;  %v1745_v13 = vpack.c.bf16 %v107_v10, %v105_v9  ;;  %v104_v14 = vld [vmem:[%s3018_s1 + $0x20] sm:$0xff]  ;;  %v106_v15 = vld [vmem:[%s3018_s1 + $0x30] sm:$0xff]  ;;  %v109_v16 = vld [vmem:[%s3018_s1 + $0x48] sm:$0xff]  ;;  %v37_v17 = vunpack.c.0.s8 %v36_v6  ;;  %vm749_vm9 = vcmask 785408  }
   0x4   :  { %1742 = vmatprep.subr.bf16.mxu0 %v1741_v7  ;;  %v111_v18 = vld [vmem:[%s3018_s1 + $0x58] sm:$0xff]  ;;  %v2027_v19 = vld [vmem:[%s3018_s1 + $0x40] sm:$0xff]  ;;  %v110_v20 = vld [vmem:[%s3018_s1 + $0x50] sm:$0xff]  ;;  %v1747_v21 = vpack.c.bf16 %v106_v15, %v104_v14  ;;  %vm1044_vm10 = vcmask 1041409   ;;  %vm1047_vm11 = vcmask 1043459   ;;  %vm1050_vm12 = vcmask 1045509  }
   0x5   :  { %1744 = vmatpush1.bf16.msra.mxu0 %v1743_v12  ;;  %v2035_v22 = vld [vmem:[%s3018_s1 + $0xc8] sm:$0xff]  ;;  %v2040_v23 = vld [vmem:[%s3018_s1 + $0xd8] sm:$0xff]  ;;  %v26_v24 = vld [vmem:[%s3019_s0] sm:$0xff]  ;;  %v2046_v25 = vsub.s32 %v37_v17, %v2010_v11  ;;  %v1749_v26 = vpack.c.bf16 %v111_v18, %v109_v16  ;;  %v1751_v31 = vpack.c.bf16 %v110_v20, %v2027_v19  ;;  %vm1058_vm13 = vcmask 523264  }
   0x6   :  { %1746 = vmatprep.subr.bf16.mxu0 %v1745_v13  ;;  %v34_v27 = vcombine.high %v26_v24, %v26_v24  ;;  %v2051_v28 = vld [vmem:[%s3018_s1 + $0xc0] sm:$0xff]  ;;  %v2056_v29 = vld [vmem:[%s3018_s1 + $0xd0] sm:$0xff]  ;;  %v1590_v30 = vld [vmem:[%s3018_s1 + $0x68] sm:$0xff]  ;;  %v1753_v32 = vpack.c.bf16 %v2040_v23, %v2035_v22  ;;  %vm1949_vm14 = vmmov 0   ;;  %vm1581_vm15 = vcmask 46080  }
   0x7   :  { %v2065_v33 = vrot.slane %v26_v24, %v2046_v25  ;;  %v1592_v34 = vld [vmem:[%s3018_s1 + $0x78] sm:$0xff]  ;;  %v1589_v35 = vld [vmem:[%s3018_s1 + $0x60] sm:$0xff]  ;;  %v1591_v36 = vld [vmem:[%s3018_s1 + $0x70] sm:$0xff]  ;;  %v1755_v38 = vpack.c.bf16 %v2056_v29, %v2051_v28 }
   0x8   :  { %v2077_v37 = vrot.slane %v34_v27, %v2046_v25  ;;  %v1729_v39 = vpack.c.bf16 %v1592_v34, %v1590_v30  ;;  %v1731_v40 = vpack.c.bf16 %v1591_v36, %v1589_v35  ;;  %v27_v41 = vld [vmem:[%s3019_s0 + $0x8] sm:$0xff]  ;;  %v28_v42 = vld [vmem:[%s3019_s0 + $0x10] sm:$0xff]  ;;  %v2105_v48 = vld [vmem:[%s3018_s1 + $0xf8] sm:$0xff] }
   0x9   :  { %v2090_v43 = vld [vmem:[%s3018_s1 + $0xe8] sm:$0xff]  ;;  %1748 = vmatpush1.bf16.msra.mxu0 %v1747_v21  ;;  %v2094_v44 = vcombine.high %v2065_v33, %v2065_v33  ;;  %v51_v45 = vcombine.high %v27_v41, %v27_v41  ;;  %v2097_v46 = vrot.slane %v27_v41, %v2046_v25  ;;  %v2100_v47 = vrot.slane %v28_v42, %v2046_v25  ;;  %v2110_v49 = vld [vmem:[%s3018_s1 + $0xe0] sm:$0xff]  ;;  %v2115_v50 = vld [vmem:[%s3018_s1 + $0xf0] sm:$0xff] }
   0xa   :  { %1750 = vmatprep.subr.bf16.mxu0 %v1749_v26  ;;  %v2119_v51 = vcombine.high %v2077_v37, %v2077_v37  ;;  %1730 = vmatprep.subr.bf16.mxu1 %v1729_v39  ;;  %v1757_v52 = vpack.c.bf16 %v2105_v48, %v2090_v43  ;;  %v1759_v53 = vpack.c.bf16 %v2115_v50, %v2110_v49  ;;  %v1594_v54 = vld [vmem:[%s3018_s1 + $0x88] sm:$0xff]  ;;  %v1596_v55 = vld [vmem:[%s3018_s1 + $0x98] sm:$0xff]  ;;  %v1593_v56 = vld [vmem:[%s3018_s1 + $0x80] sm:$0xff]  ;;  %v1587_v57 = vrot.slane %v2065_v33, 9 }
   0xb   :  { %v335_v58 = vcombine.low %v2065_v33, %v2094_v44  ;;  %v504_v59 = vcombine.low %v2094_v44, %v2077_v37  ;;  %1732 = vmatpush1.bf16.msra.mxu1 %v1731_v40  ;;  %v2140_v60 = vrot.slane %v51_v45, %v2046_v25  ;;  %v2144_v61 = vcombine.high %v2097_v46, %v2097_v46  ;;  %v1595_v62 = vld [vmem:[%s3018_s1 + $0x90] sm:$0xff]  ;;  %v29_v63 = vld [vmem:[%s3019_s0 + $0x18] sm:$0xff]  ;;  %v2157_v5 = vld [vmem:[%s3018_s1 + $0x108] sm:$0xff] }
   0xc   :  { %v336_v0 = vcombine.low %v2077_v37, %v2119_v51  ;;  %v1733_v1 = vpack.c.bf16 %v1596_v55, %v1594_v54  ;;  %v1735_v2 = vpack.c.bf16 %v1595_v62, %v1593_v56  ;;  %v67_v3 = vcombine.high %v28_v42, %v28_v42  ;;  %v2162_v6 = vld [vmem:[%s3018_s1 + $0x118] sm:$0xff]  ;;  %v1598_v7 = vld [vmem:[%s3018_s1 + $0xa8] sm:$0xff]  ;;  %v2182_v14 = vld [vmem:[%s3018_s1 + $0x100] sm:$0xff] }
   0xd   :  { %1752 = vmatpush1.bf16.msra.mxu0 %v1751_v31  ;;  %v343_v8 = vrot.slane %v335_v58, %v2046_v25  ;;  %v352_v9 = vcombine.low %v2097_v46, %v2144_v61  ;;  %v353_v10 = vcombine.low %v2140_v60, %v2100_v47  ;;  %v2174_v12 = vcombine.high %v2100_v47, %v2100_v47  ;;  %v1600_v13 = vld [vmem:[%s3018_s1 + $0xb8] sm:$0xff]  ;;  %v2187_v15 = vld [vmem:[%s3018_s1 + $0x110] sm:$0xff]  ;;  %v1597_v19 = vld [vmem:[%s3018_s1 + $0xa0] sm:$0xff] }
   0xe   :  { %1754 = vmatprep.subr.bf16.mxu0 %v1753_v32  ;;  %v350_v16 = vrot.slane %v336_v0, %v2046_v25  ;;  %1734 = vmatprep.subr.bf16.mxu1 %v1733_v1  ;;  %v2191_v17 = vrot.slane %v67_v3, %v2046_v25  ;;  %v2194_v18 = vrot.slane %v29_v63, %v2046_v25  ;;  %v1599_v20 = vld [vmem:[%s3018_s1 + $0xb0] sm:$0xff]  ;;  %vm116_vm5 = vmor %vm114_vm0, %vm115_vm1  ;;  %v123_v21 = vrot.slane %v2094_v44, 7 }
   0xf   :  { %v360_v22 = vrot.slane %v352_v9, %v2046_v25  ;;  %v367_v23 = vrot.slane %v353_v10, %v2046_v25  ;;  %1736 = vmatpush1.bf16.msra.mxu1 %v1735_v2  ;;  %v145_v24 = vrot.slane %v2174_v12, 7  ;;  %v1761_v26 = vpack.c.bf16 %v2162_v6, %v2157_v5  ;;  %vm118_vm6 = vmor %vm116_vm5, %vm117_vm2 }
  0x10   :  { %v351_v27 = vcombine.low %v343_v8, %v350_v16  ;;  %v2213_v30 = vcombine.high %v2191_v17, %v2191_v17  ;;  %v369_v31 = vcombine.low %v2174_v12, %v2191_v17  ;;  %v1737_v32 = vpack.c.bf16 %v1600_v13, %v1598_v7  ;;  %vm2218_vm7 = vmor %vm118_vm6, %vm119_vm4 }
  0x11   :  { %v368_v34 = vcombine.low %v360_v22, %v367_v23  ;;  %v1763_v35 = vpack.c.bf16 %v2187_v15, %v2182_v14  ;;  %v1739_v36 = vpack.c.bf16 %v1599_v20, %v1597_v19  ;;  %v84_v39 = vcombine.high %v29_v63, %v29_v63 }
  0x12   :  { %1605 = vmatmul.mubr.msk.f32.vlgmr.msra.gmra.mrb[0].mxu0 %vm237_vm3, %v351_v27  ;;  %v370_v40 = vcombine.low %v2213_v30, %v2194_v18  ;;  %v377_v41 = vrot.slane %v369_v31, %v2046_v25  ;;  %1738 = vmatprep.subr.bf16.mxu1 %v1737_v32  ;;  %v2230_v42 = vcombine.high %v2194_v18, %v2194_v18  ;;  %v125_v44 = vrot.slane %v123_v21, 2 }
  0x13   :  { %1756 = vmatpush1.bf16.msra.mxu0 %v1755_v38  ;;  %472 = vmatprep.mubr.f32.mxu0 %v1944_v4  ;;  %v2237_v45 = vrot.slane %v84_v39, %v2046_v25  ;;  %v124_v54 = vsel %vm2218_vm7, %v1587_v57, %v123_v21  ;;  %v126_v55 = vrot.slane %v2077_v37, 7  ;;  %v129_v56 = vrot.slane %v2119_v51, 7 }
  0x14   :  { %1758 = vmatprep.subr.bf16.mxu0 %v1757_v52  ;;  %v384_v58 = vrot.slane %v370_v40, %v2046_v25  ;;  %1740 = vmatpush1.bf16.msra.mxu1 %v1739_v36  ;;  %v132_v28 = vrot.slane %v2097_v46, 7  ;;  %v505_v29 = vcombine.low %v2119_v51, %v2097_v46  ;;  %v2251_v38 = vrot.slane %v504_v59, %v2046_v25 }
  0x15   :  { %v386_v37 = vcombine.low %v2230_v42, %v2237_v45  ;;  %v127_v57 = vsel %vm2218_vm7, %v125_v44, %v126_v55  ;;  %v128_v62 = vrot.slane %v126_v55, 2  ;;  %v131_v43 = vrot.slane %v129_v56, 2 }
  0x16   :  { %1606 = vmatmul.mubr.msk.f32.gmra.mrb[2].mxu0 %vm237_vm3, %v368_v34  ;;  %v385_v48 = vcombine.low %v377_v41, %v384_v58  ;;  %v178_v52 = vcombine.low %v124_v54, %v127_v57  ;;  %v519_v63 = vrot.slane %v505_v29, %v2046_v25  ;;  %v112_v46 = vcombine.high %v2140_v60, %v2140_v60 }
  0x17   :  { %1760 = vmatpush1.bf16.msra.mxu0 %v1759_v53  ;;  %478 = vmatprep.mubr.f32.mxu0 %v1944_v4  ;;  %v393_v51 = vrot.slane %v386_v37, %v2046_v25  ;;  %v130_v59 = vsel %vm2218_vm7, %v128_v62, %v129_v56  ;;  %v133_v0 = vsel %vm2218_vm7, %v131_v43, %v132_v28  ;;  %v134_v1 = vrot.slane %v132_v28, 2 }
  0x18   :  { %1762 = vmatprep.subr.bf16.mxu0 %v1761_v26  ;;  %v179_v2 = vcombine.low %v130_v59, %v133_v0  ;;  %v186_v3 = vrot.slane %v178_v52, %v2046_v25  ;;  %v520_v5 = vcombine.low %v2251_v38, %v519_v63  ;;  %v135_v49 = vrot.slane %v2144_v61, 7 }
  0x19   :  { %v138_v50 = vrot.slane %v2140_v60, 7  ;;  %v141_v53 = vrot.slane %v112_v46, 7  ;;  %v1588_v6 = vrot.slane %v2100_v47, 9  ;;  %v521_v7 = vcombine.low %v2144_v61, %v2140_v60 }
  0x1a   :  { %1607 = vmatmul.mubr.msk.f32.gmra.mrb[4].mxu0 %vm237_vm3, %v385_v48  ;;  %v193_v8 = vrot.slane %v179_v2, %v2046_v25  ;;  %v136_v9 = vsel %vm2218_vm7, %v134_v1, %v135_v49  ;;  %v137_v10 = vrot.slane %v135_v49, 2  ;;  %v1621_v13 = vcombine.high %v2140_v60, %v2100_v47  ;;  %v1628_v1 = vld [vmem:[%s3020_s3 + $0xc0] sm:$0xff]  ;;  %v1629_v2 = vld [vmem:[%s3020_s3 + $0xc8] sm:$0xff] }
  0x1b   :  { %484 = vmatprep.mubr.f32.mxu0 %v1944_v4  ;;  %1764 = vmatpush1.bf16.msra.mxu0 %v1763_v35  ;;  %v140_v14 = vrot.slane %v138_v50, 2  ;;  %v146_v61 = vsel %vm2218_vm7, %v1588_v6, %v145_v24  ;;  %v529_v15 = vrot.slane %v521_v7, %v2046_v25  ;;  %v147_v16 = vrot.slane %v145_v24, 2  ;;  %v942_v49 = vld [vmem:[%s3020_s3 + $0x8] sm:$0xff] }
  0x1c   :  { %v194_v19 = vcombine.low %v186_v3, %v193_v8  ;;  %v139_v20 = vsel %vm2218_vm7, %v137_v10, %v138_v50  ;;  %v536_v47 = vrot.slane %v1621_v13, %v2046_v25  ;;  %v148_v60 = vrot.slane %v2191_v17, 7  ;;  %v941_v3 = vld [vmem:[%s3020_s3] sm:$0xff]  ;;  %v1630_v50 = vld [vmem:[%s3020_s3 + $0xd0] sm:$0xff] }
  0x1d   :  { %v142_v21 = vsel %vm2218_vm7, %v140_v14, %v141_v53  ;;  %v195_v22 = vcombine.low %v136_v9, %v139_v20  ;;  %v151_v23 = vrot.slane %v2213_v30, 7  ;;  %v154_v26 = vrot.slane %v2194_v18, 7  ;;  %v1631_v53 = vld [vmem:[%s3020_s3 + $0xd8] sm:$0xff]  ;;  %v943_v8 = vld [vmem:[%s3020_s3 + $0x10] sm:$0xff]  ;;  %v1632_v13 = vld [vmem:[%s3020_s3 + $0xe0] sm:$0xff] }
  0x1e   :  { %1608 = vmatmul.mubr.msk.f32.gmra.mrb[6].mxu0 %vm237_vm3, %v393_v51  ;;  %1601 = vmatmul.mubr.msk.f32.vlgmr.msra.gmra.mrb[0].mxu1 %vm237_vm3, %v194_v19  ;;  %v196_v12 = vcombine.low %v142_v21, %v146_v61  ;;  %v537_v24 = vcombine.low %v529_v15, %v536_v47  ;;  %v149_v27 = vsel %vm2218_vm7, %v147_v16, %v148_v60  ;;  %v150_v31 = vrot.slane %v148_v60, 2  ;;  %v944_v9 = vld [vmem:[%s3020_s3 + $0x18] sm:$0xff]  ;;  %v1633_v14 = vld [vmem:[%s3020_s3 + $0xe8] sm:$0xff]  ;;  %v945_v15 = vld [vmem:[%s3020_s3 + $0x20] sm:$0xff] }
  0x1f   :  { %635 = vmatprep.mubr.f32.mxu0 %v1944_v4  ;;  %316 = vmatprep.mubr.f32.mxu1 %v1944_v4  ;;  %v203_v32 = vrot.slane %v195_v22, %v2046_v25  ;;  %v153_v34 = vrot.slane %v151_v23, 2  ;;  %v156_v35 = vrot.slane %v154_v26, 2  ;;  %v157_v36 = vrot.slane %v2230_v42, 7  ;;  %v946_v16 = vld [vmem:[%s3020_s3 + $0x28] sm:$0xff]  ;;  %v668_v60 = vld [vmem:[%s3021_s2] sm:$0x3] }
  0x20   :  { %v210_v39 = vrot.slane %v196_v12, %v2046_v25  ;;  %v152_v40 = vsel %vm2218_vm7, %v150_v31, %v151_v23  ;;  %v538_v41 = vcombine.low %v2191_v17, %v2213_v30  ;;  %v539_v44 = vcombine.low %v2194_v18, %v2230_v42  ;;  %v1634_v21 = vld [vmem:[%s3020_s3 + $0xf0] sm:$0xff]  ;;  %v1635_v22 = vld [vmem:[%s3020_s3 + $0xf8] sm:$0xff] }
  0x21   :  { %v155_v54 = vsel %vm2218_vm7, %v153_v34, %v154_v26  ;;  %v158_v55 = vsel %vm2218_vm7, %v156_v35, %v157_v36  ;;  %v212_v56 = vcombine.low %v149_v27, %v152_v40  ;;  %v113_v58 = vcombine.high %v2237_v45, %v2237_v45  ;;  %v947_v12 = vld [vmem:[%s3020_s3 + $0x30] sm:$0xff]  ;;  %v1636_v35 = vld [vmem:[%s3020_s3 + $0x100] sm:$0xff] }
  0x22   :  { %1622 = vmatmul.mubr.msk.f32.vlgmr.msra.gmra.mrb[0].mxu0 %vm237_vm3, %v520_v5  ;;  %v211_v28 = vcombine.low %v203_v32, %v210_v39  ;;  %v213_v29 = vcombine.low %v155_v54, %v158_v55  ;;  %v546_v38 = vrot.slane %v538_v41, %v2046_v25  ;;  %v553_v17 = vrot.slane %v539_v44, %v2046_v25  ;;  %v949_v55 = vld [vmem:[%s3020_s3 + $0x40] sm:$0xff] }
  0x23   :  { %641 = vmatprep.mubr.f32.mxu0 %v1944_v4  ;;  %v220_v18 = vrot.slane %v212_v56, %v2046_v25  ;;  %v159_v30 = vrot.slane %v157_v36, 2  ;;  %v160_v42 = vrot.slane %v2237_v45, 7  ;;  %v163_v37 = vrot.slane %v113_v58, 7  ;;  %v1637_v36 = vld [vmem:[%s3020_s3 + $0x108] sm:$0xff] }
  0x24   :  { %1602 = vmatmul.mubr.msk.f32.gmra.mrb[2].mxu1 %vm237_vm3, %v211_v28  ;;  %v227_v57 = vrot.slane %v213_v29, %v2046_v25  ;;  %v554_v52 = vcombine.low %v546_v38, %v553_v17  ;;  %v555_v63 = vcombine.low %v2237_v45, %v113_v58  ;;  %v1946_v45 = vmov 0.0|0.0   ;;  %v950_v56 = vld [vmem:[%s3020_s3 + $0x48] sm:$0xff] }
  0x25   :  { %322 = vmatprep.mubr.f32.mxu1 %v1944_v4  ;;  %v161_v62 = vsel %vm2218_vm7, %v159_v30, %v160_v42  ;;  %v162_v43 = vrot.slane %v160_v42, 2  ;;  %1765 = vmatprep.subr.bf16.mxu1 %v1946_v45  ;;  %v1766_v5 = vpack.c.bf16 %v1629_v2, %v1628_v1  ;;  %v1802_v6 = vpack.c.bf16 %v942_v49, %v941_v3  ;;  %v1638_v42 = vld [vmem:[%s3020_s3 + $0x110] sm:$0xff]  ;;  %v1640_v2 = vld [vmem:[%s3020_s3 + $0x120] sm:$0xff]  ;;  %v1641_v3 = vld [vmem:[%s3020_s3 + $0x128] sm:$0xff] }
  0x26   :  { %1623 = vmatmul.mubr.msk.f32.gmra.mrb[2].mxu0 %vm237_vm3, %v537_v24  ;;  %v228_v48 = vcombine.low %v220_v18, %v227_v57  ;;  %v562_v0 = vrot.slane %v555_v63, %v2046_v25  ;;  %1801 = vmatprep.subr.bf16.mxu0 %v1946_v45  ;;  %v1769_v7 = vpack.c.bf16 %v1631_v53, %v1630_v50  ;;  %v2387_v20 = vsub.s32 0, %v2010_v11  ;;  %v948_v24 = vld [vmem:[%s3020_s3 + $0x38] sm:$0xff] }
  0x27   :  { %647 = vmatprep.mubr.f32.mxu0 %v1944_v4  ;;  %v164_v46 = vsel %vm2218_vm7, %v162_v43, %v163_v37  ;;  %1767 = vmatpush1.bf16.msra.mxu1 %v1766_v5  ;;  %v1805_v10 = vpack.c.bf16 %v944_v9, %v943_v8  ;;  %v1772_v61 = vpack.c.bf16 %v1633_v14, %v1632_v13  ;;  %v676_v32 = vsub.s32 1, %v2010_v11  ;;  %v1639_v37 = vld [vmem:[%s3020_s3 + $0x118] sm:$0xff]  ;;  %v953_v8 = vld [vmem:[%s3020_s3 + $0x60] sm:$0xff]  ;;  %v954_v9 = vld [vmem:[%s3020_s3 + $0x68] sm:$0xff] }
  0x28   :  { %1603 = vmatmul.mubr.msk.f32.gmra.mrb[4].mxu1 %vm237_vm3, %v228_v48  ;;  %v229_v51 = vcombine.low %v161_v62, %v164_v46  ;;  %1803 = vmatpush1.bf16.msra.mxu0 %v1802_v6  ;;  %v1808_v19 = vpack.c.bf16 %v946_v16, %v945_v15  ;;  %v1775_v26 = vpack.c.bf16 %v1635_v22, %v1634_v21  ;;  %v951_v48 = vld [vmem:[%s3020_s3 + $0x50] sm:$0xff] }
  0x29   :  { %328 = vmatprep.mubr.f32.mxu1 %v1944_v4  ;;  %1768 = vmatprep.subr.bf16.mxu1 %v1946_v45  ;;  %v1811_v27 = vpack.c.bf16 %v948_v24, %v947_v12  ;;  %v2407_v31 = vrot.slane %v668_v60, %v2387_v20  ;;  %v1778_v41 = vpack.c.bf16 %v1637_v36, %v1636_v35  ;;  %v1642_v16 = vld [vmem:[%s3020_s3 + $0x130] sm:$0xff]  ;;  %v1644_v12 = vld [vmem:[%s3020_s3 + $0x140] sm:$0xff]  ;;  %v1645_v24 = vld [vmem:[%s3020_s3 + $0x148] sm:$0xff] }
  0x2a   :  { %1624 = vmatmul.mubr.msk.f32.gmra.mrb[4].mxu0 %vm237_vm3, %v554_v52  ;;  %v236_v59 = vrot.slane %v229_v51, %v2046_v25  ;;  %1804 = vmatprep.subr.bf16.mxu0 %v1946_v45  ;;  %v2427_v28 = vrot.slane %v668_v60, %v676_v32  ;;  %v1814_v38 = vpack.c.bf16 %v950_v56, %v949_v55  ;;  %v952_v52 = vld [vmem:[%s3020_s3 + $0x58] sm:$0xff]  ;;  %v955_v22 = vld [vmem:[%s3020_s3 + $0x70] sm:$0xff]  ;;  %v957_v32 = vld [vmem:[%s3020_s3 + $0x80] sm:$0xff] }
  0x2b   :  { %653 = vmatprep.mubr.f32.mxu0 %v1944_v4  ;;  %1770 = vmatpush1.bf16.msra.mxu1 %v1769_v7  ;;  %v1781_v43 = vpack.c.bf16 %v1639_v37, %v1638_v42  ;;  %v1817_v51 = vpack.c.bf16 %v952_v52, %v951_v48  ;;  %v1784_v50 = vpack.c.bf16 %v1641_v3, %v1640_v2  ;;  %v1646_v36 = vld [vmem:[%s3020_s3 + $0x150] sm:$0xff]  ;;  %v1648_v55 = vld [vmem:[%s3020_s3 + $0x160] sm:$0xff]  ;;  %v1649_v56 = vld [vmem:[%s3020_s3 + $0x168] sm:$0xff] }
  0x2c   :  { %1604 = vmatmul.mubr.msk.f32.gmra.mrb[6].mxu1 %vm237_vm3, %v236_v59  ;;  %1771 = vmatprep.subr.bf16.mxu1 %v1946_v45  ;;  %v1820_v13 = vpack.c.bf16 %v954_v9, %v953_v8 }
  0x2d   :  { %1806 = vmatpush1.bf16.msra.mxu0 %v1805_v10 }
  0x2e   :  { %1625 = vmatmul.mubr.msk.f32.gmra.mrb[6].mxu0 %vm237_vm3, %v562_v0  ;;  %1807 = vmatprep.subr.bf16.mxu0 %v1946_v45 }
  0x2f   :  { %1773 = vmatpush1.bf16.msra.mxu1 %v1772_v61 }
  0x30   :  { %1774 = vmatprep.subr.bf16.mxu1 %v1946_v45 }
  0x31   :  { %1809 = vmatpush1.bf16.msra.mxu0 %v1808_v19  ;;  %v1643_v19 = vld [vmem:[%s3020_s3 + $0x138] sm:$0xff] }
  0x32   :  { %1810 = vmatprep.subr.bf16.mxu0 %v1946_v45  ;;  %v1787_v21 = vpack.c.bf16 %v1643_v19, %v1642_v16 }
  0x33   :  { %1776 = vmatpush1.bf16.msra.mxu1 %v1775_v26 }
  0x34   :  { %1777 = vmatprep.subr.bf16.mxu1 %v1946_v45 }
  0x35   :  { %1812 = vmatpush1.bf16.msra.mxu0 %v1811_v27  ;;  %v1790_v27 = vpack.c.bf16 %v1645_v24, %v1644_v12 }
  0x36   :  { %1813 = vmatprep.subr.bf16.mxu0 %v1946_v45 }
  0x37   :  { %1779 = vmatpush1.bf16.msra.mxu1 %v1778_v41  ;;  %v959_v41 = vld [vmem:[%s3020_s3 + $0x90] sm:$0xff] }
  0x38   :  { %1780 = vmatprep.subr.bf16.mxu1 %v1946_v45 }
  0x39   :  { %1815 = vmatpush1.bf16.msra.mxu0 %v1814_v38 }
  0x3a   :  { %1816 = vmatprep.subr.bf16.mxu0 %v1946_v45 }
  0x3b   :  { %1782 = vmatpush1.bf16.msra.mxu1 %v1781_v43 }
  0x3c   :  { %1783 = vmatprep.subr.bf16.mxu1 %v1946_v45 }
  0x3d   :  { %1818 = vmatpush1.bf16.msra.mxu0 %v1817_v51 }
  0x3e   :  { %1819 = vmatprep.subr.bf16.mxu0 %v1946_v45 }
  0x3f   :  { %1785 = vmatpush1.bf16.msra.mxu1 %v1784_v50 }
  0x40   :  { %1786 = vmatprep.subr.bf16.mxu1 %v1946_v45 }
  0x41   :  { %1821 = vmatpush1.bf16.msra.mxu0 %v1820_v13 }
  0x42   :  { %1822 = vmatprep.subr.bf16.mxu0 %v1946_v45 }
  0x43   :  { %1788 = vmatpush1.bf16.msra.mxu1 %v1787_v21 }
  0x44   :  { %1789 = vmatprep.subr.bf16.mxu1 %v1946_v45 }
  0x47   :  { %1791 = vmatpush1.bf16.msra.mxu1 %v1790_v27 }
  0x48   :  { %1792 = vmatprep.subr.bf16.mxu1 %v1946_v45 }
  0xf1   :  { %v312_v47 = vpop.f32.mrb[0].mxu1 }
  0xf2   :  { %v314_v23 = vpop.f32.mrb[1].mxu1 }
  0xf5   :  { %v637_v34 = vpop.f32.mrb[0].mxu0 }
  0xf6   :  { %v1918_v39 = vadd.f32 %v637_v34, %v312_v47  ;;  %v639_v40 = vpop.f32.mrb[1].mxu0  ;;  %v958_v34 = vld [vmem:[%s3020_s3 + $0x88] sm:$0xff] }
  0xf7   :  { %v1919_v44 = vadd.f32 %v639_v40, %v314_v23  ;;  %v318_v54 = vpop.f32.mrb[2].mxu1  ;;  %v956_v23 = vld [vmem:[%s3020_s3 + $0x78] sm:$0xff]  ;;  %v1826_v35 = vpack.c.bf16 %v958_v34, %v957_v32 }
  0xf8   :  { %v2425_v58 = vadd.f32 %v1918_v39, %v2407_v31  ;;  %v320_v29 = vpop.f32.mrb[3].mxu1  ;;  %v1823_v26 = vpack.c.bf16 %v956_v23, %v955_v22  ;;  %v1647_v39 = vld [vmem:[%s3020_s3 + $0x158] sm:$0xff] }
  0xf9   :  { %v643_v17 = vpop.f32.mrb[2].mxu0  ;;  %v2447_v63 = vadd.f32 %v1919_v44, %v2427_v28  ;;  %v1793_v40 = vpack.c.bf16 %v1647_v39, %v1646_v36  ;;  %v960_v44 = vld [vmem:[%s3020_s3 + $0x98] sm:$0xff] }
  0xfa   :  { %v1920_v18 = vadd.f32 %v643_v17, %v318_v54  ;;  %v645_v30 = vpop.f32.mrb[3].mxu0  ;;  %733 = vrot.lane.b32.xlu1 %v2425_v58, %s1947_s25  ;;  %696 = vrot.lane.b32.xlu0 %v2425_v58, %s1948_s26  ;;  %v1829_v54 = vpack.c.bf16 %v960_v44, %v959_v41  ;;  %v1796_v17 = vpack.c.bf16 %v1649_v56, %v1648_v55 }
  0xfb   :  { %v1921_v57 = vadd.f32 %v645_v30, %v320_v29  ;;  %v324_v62 = vpop.f32.mrb[4].mxu1  ;;  %1824 = vmatpush1.bf16.msra.mxu0 %v1823_v26  ;;  %1794 = vmatpush1.bf16.msra.mxu1 %v1793_v40  ;;  %v962_v30 = vld [vmem:[%s3020_s3 + $0xa8] sm:$0xff] }
  0xfc   :  { %v326_v46 = vpop.f32.mrb[5].mxu1  ;;  %v2462_v53 = vadd.f32 %v1920_v18, %v2407_v31  ;;  %1825 = vmatprep.subr.bf16.mxu0 %v1946_v45  ;;  %1795 = vmatprep.subr.bf16.mxu1 %v1946_v45  ;;  %v961_v18 = vld [vmem:[%s3020_s3 + $0xa0] sm:$0xff] }
  0xfd   :  { %v649_v59 = vpop.f32.mrb[4].mxu0  ;;  %v2465_v6 = vadd.f32 %v1921_v57, %v2427_v28  ;;  %v1832_v42 = vpack.c.bf16 %v962_v30, %v961_v18  ;;  %v963_v57 = vld [vmem:[%s3020_s3 + $0xb0] sm:$0xff]  ;;  %v2612_v30 = vld [vmem:[%s3020_s3 + $0x188] sm:$0xff] }
  0xfe   :  { %v1922_v0 = vadd.f32 %v649_v59, %v324_v62  ;;  %v651_v1 = vpop.f32.mrb[5].mxu0  ;;  %735 = vrot.lane.b32.xlu1 %v2447_v63, %s1947_s25  ;;  %698 = vrot.lane.b32.xlu0 %v2447_v63, %s1948_s26  ;;  %v964_v62 = vld [vmem:[%s3020_s3 + $0xb8] sm:$0xff] }
  0xff   :  { %v1923_v5 = vadd.f32 %v651_v1, %v326_v46  ;;  %v330_v49 = vpop.f32.mrb[6].mxu1  ;;  %1827 = vmatpush1.bf16.msra.mxu0 %v1826_v35  ;;  %1797 = vmatpush1.bf16.msra.mxu1 %v1796_v17  ;;  %v1835_v43 = vpack.c.bf16 %v964_v62, %v963_v57 }
 0x100   :  { %v332_v7 = vpop.f32.mrb[7].mxu1  ;;  %v2486_v47 = vadd.f32 %v1922_v0, %v2407_v31  ;;  %1828 = vmatprep.subr.bf16.mxu0 %v1946_v45  ;;  %1798 = vmatprep.subr.bf16.mxu1 %v1946_v45 }
 0x101   :  { %v655_v10 = vpop.f32.mrb[6].mxu0  ;;  %v2489_v60 = vadd.f32 %v1923_v5, %v2427_v28 }
 0x102   :  { %v1924_v14 = vadd.f32 %v655_v10, %v330_v49  ;;  %v657_v61 = vpop.f32.mrb[7].mxu0  ;;  %700 = vrot.lane.b32.xlu0 %v2462_v53, %s1948_s26  ;;  %702 = vrot.lane.b32.xlu1 %v2465_v6, %s1948_s26 }
 0x103   :  { %v1925_v15 = vadd.f32 %v657_v61, %v332_v7  ;;  %1830 = vmatpush1.bf16.msra.mxu0 %v1829_v54 }
 0x104   :  { %v2545_v29 = vadd.f32 %v1924_v14, %v2407_v31  ;;  %1831 = vmatprep.subr.bf16.mxu0 %v1946_v45  ;;  %v1650_v31 = vld [vmem:[%s3020_s3 + $0x170] sm:$0xff] }
 0x105   :  { %v2548_v38 = vadd.f32 %v1925_v15, %v2427_v28  ;;  %v1651_v28 = vld [vmem:[%s3020_s3 + $0x178] sm:$0xff] }
 0x106   :  { %704 = vrot.lane.b32.xlu0 %v2486_v47, %s1948_s26  ;;  %706 = vrot.lane.b32.xlu1 %v2489_v60, %s1948_s26  ;;  %v1799_v37 = vpack.c.bf16 %v1651_v28, %v1650_v31 }
 0x107   :  { %1833 = vmatpush1.bf16.msra.mxu0 %v1832_v42  ;;  %v2622_v42 = vld [vmem:[%s3020_s3 + $0x248] sm:$0xff] }
 0x108   :  { %1834 = vmatprep.subr.bf16.mxu0 %v1946_v45  ;;  %1800 = vmatpush1.bf16.msra.mxu1 %v1799_v37 }
 0x109   :  { %1837 = vmatprep.subr.bf16.mxu1 %v1946_v45 }
 0x10a   :  { %741 = vrot.lane.b32.xlu0 %v2486_v47, %s1947_s25  ;;  %743 = vrot.lane.b32.xlu1 %v2489_v60, %s1947_s25 }
 0x10b   :  { %1836 = vmatpush1.bf16.msra.mxu0 %v1835_v43 }
 0x10c   :  { %1873 = vmatprep.subr.bf16.mxu0 %v1946_v45 }
 0x10e   :  { %737 = vrot.lane.b32.xlu0 %v2462_v53, %s1947_s25  ;;  %739 = vrot.lane.b32.xlu1 %v2465_v6, %s1947_s25 }
 0x112   :  { %708 = vrot.lane.b32.xlu0 %v2545_v29, %s1948_s26  ;;  %710 = vrot.lane.b32.xlu1 %v2548_v38, %s1948_s26 }
 0x116   :  { %745 = vrot.lane.b32.xlu0 %v2545_v29, %s1947_s25  ;;  %747 = vrot.lane.b32.xlu1 %v2548_v38, %s1947_s25 }
 0x16c   :  { %v734_v48 = vpop.permute.xlu1 %733  ;;  %v697_v52 = vpop.permute.xlu0 %696 }
 0x170   :  { %v736_v46 = vpop.permute.xlu1 %735  ;;  %v699_v51 = vpop.permute.xlu0 %698 }
 0x171   :  { %v713_v59 = vsel %vm712_vm8, %v697_v52, %v699_v51  ;;  %v726_v0 = vmax.f32 %v2447_v63, %v699_v51  ;;  %v750_v2 = vsel %vm749_vm9, %v734_v48, %v736_v46  ;;  %v2634_v52 = vsub.s32 2, %v2010_v11 }
 0x172   :  { %v725_v1 = vmax.f32 %v2425_v58, %v713_v59 }
 0x173   :  { %v763_v3 = vmax.f32 %v726_v0, %v736_v46 }
 0x174   :  { %v762_v5 = vmax.f32 %v725_v1, %v750_v2  ;;  %v701_v49 = vpop.permute.xlu0 %700  ;;  %v703_v50 = vpop.permute.xlu1 %702 }
 0x175   :  { %v714_v27 = vsel %vm712_vm8, %v701_v49, %v703_v50  ;;  %v728_v41 = vmax.f32 %v2465_v6, %v703_v50  ;;  %v2617_v6 = vld [vmem:[%s3020_s3 + $0x240] sm:$0xff] }
 0x176   :  { %v778_v7 = vcombine.low %v762_v5, %v763_v3  ;;  %v779_v8 = vcombine.high %v762_v5, %v763_v3  ;;  %v727_v54 = vmax.f32 %v2462_v53, %v714_v27  ;;  %v1874_v59 = vpack.c.bf16 %v2622_v42, %v2617_v6  ;;  %v1683_v42 = vld [vmem:[%s3020_s3 + $0x260] sm:$0xff] }
 0x178   :  { %v786_v9 = vrot.slane %v778_v7, %v2046_v25  ;;  %v793_v10 = vrot.slane %v779_v8, %v2046_v25  ;;  %v705_v13 = vpop.permute.xlu0 %704  ;;  %v707_v14 = vpop.permute.xlu1 %706 }
 0x179   :  { %v715_v61 = vsel %vm712_vm8, %v705_v13, %v707_v14  ;;  %v730_v19 = vmax.f32 %v2489_v60, %v707_v14 }
 0x17a   :  { %v794_v15 = vcombine.high %v786_v9, %v786_v9  ;;  %v2589_v63 = vcombine.high %v793_v10, %v793_v10  ;;  %v860_v58 = vrot.slane %v793_v10, 7  ;;  %v1626_v16 = vrot.slane %v786_v9, 9 }
 0x17b   :  { %v729_v26 = vmax.f32 %v2486_v47, %v715_v61  ;;  %v2604_v47 = vld [vmem:[%s3020_s3 + $0x180] sm:$0xff] }
 0x17c   :  { %v857_v21 = vrot.slane %v794_v15, 7  ;;  %v862_v22 = vrot.slane %v860_v58, 2  ;;  %v863_v23 = vrot.slane %v2589_v63, 7  ;;  %v742_v12 = vpop.permute.xlu0 %741  ;;  %v744_v24 = vpop.permute.xlu1 %743  ;;  %v1838_v51 = vpack.c.bf16 %v2612_v30, %v2604_v47  ;;  %v1658_v47 = vld [vmem:[%s3020_s3 + $0x1a0] sm:$0xff]  ;;  %v1659_v30 = vld [vmem:[%s3020_s3 + $0x1a8] sm:$0xff] }
 0x17d   :  { %v752_v32 = vsel %vm749_vm9, %v742_v12, %v744_v24  ;;  %v767_v34 = vmax.f32 %v730_v19, %v744_v24 }
 0x17e   :  { %v858_v35 = vsel %vm2218_vm7, %v1626_v16, %v857_v21  ;;  %v859_v36 = vrot.slane %v857_v21, 2  ;;  %v864_v60 = vsel %vm2218_vm7, %v862_v22, %v863_v23  ;;  %v766_v39 = vmax.f32 %v729_v26, %v752_v32 }
 0x17f   :  { %v905_v40 = vmax.f32 %v786_v9, %v858_v35  ;;  %v907_v31 = vmax.f32 %v793_v10, %v864_v60  ;;  %v865_v3 = vrot.slane %v863_v23, 2 }
 0x180   :  { %v861_v44 = vsel %vm2218_vm7, %v859_v36, %v860_v58  ;;  %v814_v55 = vcombine.low %v766_v39, %v767_v34  ;;  %v815_v56 = vcombine.high %v766_v39, %v767_v34  ;;  %v738_v17 = vpop.permute.xlu0 %737  ;;  %v740_v18 = vpop.permute.xlu1 %739 }
 0x181   :  { %v906_v53 = vmax.f32 %v794_v15, %v861_v44  ;;  %v2624_v28 = vmax.f32 %v905_v40, %v794_v15  ;;  %v751_v37 = vsel %vm749_vm9, %v738_v17, %v740_v18  ;;  %v765_v48 = vmax.f32 %v728_v41, %v740_v18 }
 0x182   :  { %v2628_v57 = vrot.slane %v814_v55, %v2046_v25  ;;  %v2631_v62 = vrot.slane %v815_v56, %v2046_v25  ;;  %v764_v43 = vmax.f32 %v727_v54, %v751_v37  ;;  %v2647_v11 = vmax.f32 %v907_v31, %v2589_v63 }
 0x183   :  { %v2636_v46 = vmax.f32 %v906_v53, %v793_v10  ;;  %v929_v50 = vmax.f32 %v2624_v28, 0.0 }
 0x184   :  { %v830_v0 = vcombine.high %v2628_v57, %v2628_v57  ;;  %v876_v1 = vrot.slane %v2628_v57, 7  ;;  %v882_v2 = vrot.slane %v2631_v62, 7  ;;  %v709_v5 = vpop.permute.xlu0 %708  ;;  %v711_v49 = vpop.permute.xlu1 %710  ;;  %v2652_v7 = vcombine.high %v2631_v62, %v2631_v62 }
 0x185   :  { %v796_v8 = vcombine.low %v764_v43, %v765_v48  ;;  %v930_v9 = vmax.f32 %v2636_v46, 0.0  ;;  %v797_v14 = vcombine.high %v764_v43, %v765_v48  ;;  %v716_v58 = vsel %vm712_vm8, %v709_v5, %v711_v49 }
 0x186   :  { %v878_v10 = vrot.slane %v876_v1, 2  ;;  %v879_v13 = vrot.slane %v830_v0, 7  ;;  %v884_v61 = vrot.slane %v882_v2, 2  ;;  %v732_v16 = vmax.f32 %v2548_v38, %v711_v49 }
 0x187   :  { %v804_v15 = vrot.slane %v796_v8, %v2046_v25  ;;  %v811_v21 = vrot.slane %v797_v14, %v2046_v25  ;;  %v731_v22 = vmax.f32 %v2545_v29, %v716_v58  ;;  %v885_v56 = vrot.slane %v2652_v7, 7 }
 0x188   :  { %v880_v19 = vsel %vm2218_vm7, %v878_v10, %v879_v13  ;;  %v746_v23 = vpop.permute.xlu0 %745  ;;  %v748_v26 = vpop.permute.xlu1 %747  ;;  %v881_v12 = vrot.slane %v879_v13, 2  ;;  %v1136_v49 = vrot.slane %v929_v50, %v2387_v20  ;;  %v999_v13 = vrot.slane %v930_v9, %v2387_v20 }
 0x189   :  { %v912_v24 = vmax.f32 %v2628_v57, %v880_v19  ;;  %v812_v27 = vcombine.high %v804_v15, %v804_v15  ;;  %v866_v32 = vrot.slane %v804_v15, 7  ;;  %v753_v34 = vsel %vm749_vm9, %v746_v23, %v748_v26 }
 0x18a   :  { %v813_v35 = vcombine.high %v811_v21, %v811_v21  ;;  %v872_v36 = vrot.slane %v811_v21, 7  ;;  %v768_v60 = vmax.f32 %v731_v22, %v753_v34  ;;  %v769_v38 = vmax.f32 %v732_v16, %v748_v26 }
 0x18b   :  { %v867_v39 = vsel %vm2218_vm7, %v865_v3, %v866_v32  ;;  %v868_v40 = vrot.slane %v866_v32, 2  ;;  %v869_v41 = vrot.slane %v812_v27, 7  ;;  %v883_v29 = vsel %vm2218_vm7, %v881_v12, %v882_v2 }
 0x18c   :  { %v1627_v44 = vrot.slane %v813_v35, 9  ;;  %v908_v54 = vmax.f32 %v2589_v63, %v867_v39  ;;  %v832_v55 = vcombine.low %v768_v60, %v769_v38  ;;  %v913_v53 = vmax.f32 %v830_v0, %v883_v29 }
 0x18d   :  { %v870_v17 = vsel %vm2218_vm7, %v868_v40, %v869_v41  ;;  %v871_v18 = vrot.slane %v869_v41, 2  ;;  %v924_v31 = vmax.f32 %v912_v24, %v830_v0  ;;  %v931_v63 = vmax.f32 %v2647_v11, 0.0 }
 0x18e   :  { %v877_v28 = vsel %vm2218_vm7, %v1627_v44, %v876_v1  ;;  %v909_v37 = vmax.f32 %v804_v15, %v870_v17  ;;  %v920_v43 = vmax.f32 %v908_v54, %v804_v15  ;;  %v2675_v48 = vrot.slane %v832_v55, %v2046_v25 }
 0x18f   :  { %v873_v46 = vsel %vm2218_vm7, %v871_v18, %v872_v36  ;;  %v886_v2 = vsel %vm2218_vm7, %v884_v61, %v885_v56  ;;  %v925_v0 = vmax.f32 %v913_v53, %v2631_v62  ;;  %v911_v3 = vmax.f32 %v813_v35, %v877_v28  ;;  %v1656_v18 = vld [vmem:[%s3020_s3 + $0x190] sm:$0xff]  ;;  %v1657_v53 = vld [vmem:[%s3020_s3 + $0x198] sm:$0xff] }
 0x190   :  { %v910_v1 = vmax.f32 %v812_v27, %v873_v46  ;;  %v2685_v5 = vmax.f32 %v909_v37, %v812_v27  ;;  %v932_v25 = vmax.f32 %v920_v43, 0.0  ;;  %v914_v11 = vmax.f32 %v2631_v62, %v886_v2 }
 0x191   :  { %v936_v8 = vmax.f32 %v924_v31, 0.0  ;;  %v937_v10 = vmax.f32 %v925_v0, 0.0  ;;  %v1140_v14 = vrot.slane %v929_v50, %v2634_v52  ;;  %v888_v15 = vrot.slane %v2675_v48, 7 }
 0x192   :  { %v2692_v61 = vrot.slane %v932_v25, %v2387_v20  ;;  %v926_v58 = vmax.f32 %v914_v11, %v2652_v7  ;;  %v1003_v16 = vrot.slane %v930_v9, %v2634_v52  ;;  %v1011_v19 = vrot.slane %v931_v63, %v2634_v52 }
 0x193   :  { %v1019_v22 = vrot.slane %v932_v25, %v2634_v52  ;;  %v2699_v62 = vmax.f32 %v910_v1, %v811_v21  ;;  %v923_v23 = vmax.f32 %v911_v3, %v2628_v57  ;;  %v933_v26 = vmax.f32 %v2685_v5, 0.0  ;;  %v1699_v5 = vld [vmem:[%s3020_s3 + $0x2e0] sm:$0xff] }
 0x194   :  { %v2704_v50 = vrot.slane %v931_v63, %v2387_v20  ;;  %v938_v12 = vmax.f32 %v926_v58, 0.0  ;;  %v1027_v24 = vrot.slane %v936_v8, %v2634_v52  ;;  %v2708_v27 = vrot.slane %v937_v10, %v2634_v52  ;;  %v1682_v58 = vld [vmem:[%s3020_s3 + $0x258] sm:$0xff] }
 0x195   :  { %v1052_v9 = vsel %vm1044_vm10, %v1011_v19, %v1003_v16  ;;  %v1023_v21 = vrot.slane %v936_v8, %v2387_v20  ;;  %v2714_v34 = vrot.slane %v937_v10, %v2387_v20  ;;  %v935_v41 = vmax.f32 %v923_v23, 0.0 }
 0x196   :  { %v1053_v32 = vsel %vm115_vm1, %v1019_v22, %v1052_v9  ;;  %v1045_v57 = vsel %vm1044_vm10, %v2704_v50, %v999_v13  ;;  %v2719_v35 = vrot.slane %v938_v12, %v2634_v52  ;;  %v2723_v60 = vrot.slane %v938_v12, %v2387_v20 }
 0x197   :  { %v1054_v36 = vsel %vm1047_vm11, %v1027_v24, %v1053_v32  ;;  %v1046_v38 = vsel %vm115_vm1, %v2692_v61, %v1045_v57  ;;  %v1154_v29 = vsel %vm1044_vm10, %v1003_v16, %v1140_v14  ;;  %v934_v44 = vmax.f32 %v2699_v62, 0.0  ;;  %v1661_v57 = vld [vmem:[%s3020_s3 + $0x1b8] sm:$0xff] }
 0x198   :  { %v1055_v39 = vsel %vm117_vm2, %v2708_v27, %v1054_v36  ;;  %v1048_v40 = vsel %vm1047_vm11, %v1023_v21, %v1046_v38  ;;  %v1149_v17 = vsel %vm1044_vm10, %v999_v13, %v1136_v49  ;;  %v1148_v28 = vrot.slane %v935_v41, %v2634_v52  ;;  %v1702_v62 = vld [vmem:[%s3020_s3 + $0x2f8] sm:$0xff] }
 0x199   :  { %v1056_v54 = vsel %vm1050_vm12, %v2719_v35, %v1055_v39  ;;  %v1049_v55 = vsel %vm117_vm2, %v2714_v34, %v1048_v40  ;;  %v1155_v37 = vsel %vm115_vm1, %v1011_v19, %v1154_v29  ;;  %v1144_v43 = vrot.slane %v935_v41, %v2387_v20  ;;  %v1662_v41 = vld [vmem:[%s3020_s3 + $0x1c0] sm:$0xff]  ;;  %v1663_v29 = vld [vmem:[%s3020_s3 + $0x1c8] sm:$0xff] }
 0x19a   :  { %1652 = vmatprep.mubr.msk.f32.mxu1 %vm1058_vm13, %v1056_v54  ;;  %v1051_v31 = vsel %vm1050_vm12, %v2723_v60, %v1049_v55  ;;  %v1150_v63 = vsel %vm115_vm1, %v2704_v50, %v1149_v17  ;;  %v887_v46 = vrot.slane %v885_v56, 2  ;;  %v1266_v2 = vrot.slane %v933_v26, %v2634_v52 }
 0x19b   :  { %1126 = vmatmul.mubr.f32.vlgmr.msra.gmra.mrb[8].mxu1 %v1051_v31  ;;  %v840_v0 = vcombine.high %v2675_v48, %v2675_v48  ;;  %v1156_v1 = vsel %vm1047_vm11, %v1148_v28, %v1155_v37  ;;  %v1151_v3 = vsel %vm1047_vm11, %v1144_v43, %v1150_v63  ;;  %v1841_v25 = vpack.c.bf16 %v1657_v53, %v1656_v18  ;;  %v1685_v18 = vld [vmem:[%s3020_s3 + $0x270] sm:$0xff]  ;;  %v1686_v53 = vld [vmem:[%s3020_s3 + $0x278] sm:$0xff] }
 0x19c   :  { %1839 = vmatpush1.bf16.msra.mxu1 %v1838_v51  ;;  %v1280_v49 = vsel %vm1044_vm10, %v1019_v22, %v1011_v19  ;;  %v890_v11 = vrot.slane %v888_v15, 2  ;;  %v1157_v56 = vsel %vm117_vm2, %v1027_v24, %v1156_v1  ;;  %v1152_v8 = vsel %vm117_vm2, %v1023_v21, %v1151_v3  ;;  %v1660_v21 = vld [vmem:[%s3020_s3 + $0x1b0] sm:$0xff]  ;;  %v1665_v63 = vld [vmem:[%s3020_s3 + $0x1d8] sm:$0xff]  ;;  %v1666_v3 = vld [vmem:[%s3020_s3 + $0x1e0] sm:$0xff] }
 0x19d   :  { %1840 = vmatprep.subr.bf16.mxu1 %v1946_v45  ;;  %v889_v10 = vsel %vm2218_vm7, %v887_v46, %v888_v15  ;;  %v1158_v51 = vsel %vm1050_vm12, %v2708_v27, %v1157_v56  ;;  %v1153_v13 = vsel %vm1050_vm12, %v2714_v34, %v1152_v8  ;;  %v1681_v15 = vld [vmem:[%s3020_s3 + $0x250] sm:$0xff]  ;;  %v1393_v16 = vrot.slane %v934_v44, %v2634_v52 }
 0x19e   :  { %v915_v14 = vmax.f32 %v2652_v7, %v889_v10  ;;  %1653 = vmatprep.mubr.msk.f32.mxu0 %vm1058_vm13, %v1158_v51  ;;  %v1281_v19 = vsel %vm115_vm1, %v1266_v2, %v1280_v49  ;;  %v891_v23 = vrot.slane %v840_v0, 7  ;;  %v1407_v12 = vsel %vm1044_vm10, %v1266_v2, %v1019_v22  ;;  %v1664_v43 = vld [vmem:[%s3020_s3 + $0x1d0] sm:$0xff]  ;;  %v1688_v2 = vld [vmem:[%s3020_s3 + $0x288] sm:$0xff] }
 0x19f   :  { %1227 = vmatmul.mubr.f32.vlgmr.msra.gmra.mrb[8].mxu0 %v1153_v13  ;;  %v1844_v24 = vpack.c.bf16 %v1659_v30, %v1658_v47  ;;  %v1877_v9 = vpack.c.bf16 %v1682_v58, %v1681_v15  ;;  %v1282_v6 = vsel %vm1047_vm11, %v2708_v27, %v1281_v19  ;;  %v1408_v36 = vsel %vm115_vm1, %v1393_v16, %v1407_v12  ;;  %v1689_v49 = vld [vmem:[%s3020_s3 + $0x290] sm:$0xff]  ;;  %v1669_v47 = vld [vmem:[%s3020_s3 + $0x1f8] sm:$0xff]  ;;  %v1691_v30 = vld [vmem:[%s3020_s3 + $0x2a0] sm:$0xff] }
 0x1a0   :  { %1842 = vmatpush1.bf16.msra.mxu1 %v1841_v25  ;;  %v2792_v7 = vmax.f32 %v915_v14, %v2675_v48  ;;  %1875 = vmatpush1.bf16.msra.mxu0 %v1874_v59  ;;  %v892_v32 = vsel %vm2218_vm7, %v890_v11, %v891_v23  ;;  %v1684_v59 = vld [vmem:[%s3020_s3 + $0x268] sm:$0xff]  ;;  %v1847_v27 = vpack.c.bf16 %v1661_v57, %v1660_v21  ;;  %v1690_v11 = vld [vmem:[%s3020_s3 + $0x298] sm:$0xff]  ;;  %v1668_v10 = vld [vmem:[%s3020_s3 + $0x1f0] sm:$0xff] }
 0x1a1   :  { %1843 = vmatprep.subr.bf16.mxu1 %v1946_v45  ;;  %1876 = vmatprep.subr.bf16.mxu0 %v1946_v45  ;;  %v916_v33 = vmax.f32 %v2675_v48, %v892_v32  ;;  %v1283_v48 = vsel %vm117_vm2, %v2719_v35, %v1282_v6  ;;  %v1880_v40 = vpack.c.bf16 %v1684_v59, %v1683_v42  ;;  %v1667_v25 = vld [vmem:[%s3020_s3 + $0x1e8] sm:$0xff]  ;;  %v1670_v15 = vld [vmem:[%s3020_s3 + $0x200] sm:$0xff]  ;;  %v1693_v16 = vld [vmem:[%s3020_s3 + $0x2b0] sm:$0xff] }
 0x1a2   :  { %v939_v22 = vmax.f32 %v2792_v7, 0.0  ;;  %v1409_v17 = vsel %vm1047_vm11, %v2719_v35, %v1408_v36  ;;  %v1850_v35 = vpack.c.bf16 %v1663_v29, %v1662_v41  ;;  %v1883_v37 = vpack.c.bf16 %v1686_v53, %v1685_v18  ;;  %v1692_v51 = vld [vmem:[%s3020_s3 + $0x2a8] sm:$0xff]  ;;  %v1694_v19 = vld [vmem:[%s3020_s3 + $0x2b8] sm:$0xff]  ;;  %v1695_v32 = vld [vmem:[%s3020_s3 + $0x2c0] sm:$0xff] }
 0x1a3   :  { %v2822_v39 = vmax.f32 %v916_v33, %v840_v0  ;;  %v1853_v0 = vpack.c.bf16 %v1665_v63, %v1664_v43  ;;  %v1856_v56 = vpack.c.bf16 %v1667_v25, %v1666_v3  ;;  %v1889_v8 = vpack.c.bf16 %v1690_v11, %v1689_v49  ;;  %v1671_v58 = vld [vmem:[%s3020_s3 + $0x208] sm:$0xff]  ;;  %v1674_v33 = vld [vmem:[%s3020_s3 + $0x220] sm:$0xff]  ;;  %v1697_v59 = vld [vmem:[%s3020_s3 + $0x2d0] sm:$0xff] }
 0x1a4   :  { %v1274_v38 = vrot.slane %v939_v22, %v2634_v52  ;;  %1845 = vmatpush1.bf16.msra.mxu1 %v1844_v24  ;;  %1878 = vmatpush1.bf16.msra.mxu0 %v1877_v9  ;;  %v1859_v13 = vpack.c.bf16 %v1669_v47, %v1668_v10  ;;  %v1892_v14 = vpack.c.bf16 %v1692_v51, %v1691_v30  ;;  %v1672_v24 = vld [vmem:[%s3020_s3 + $0x210] sm:$0xff]  ;;  %v1673_v9 = vld [vmem:[%s3020_s3 + $0x218] sm:$0xff]  ;;  %v1696_v21 = vld [vmem:[%s3020_s3 + $0x2c8] sm:$0xff] }
 0x1a5   :  { %1846 = vmatprep.subr.bf16.mxu1 %v1946_v45  ;;  %v940_v55 = vmax.f32 %v2822_v39, 0.0  ;;  %1879 = vmatprep.subr.bf16.mxu0 %v1946_v45  ;;  %v1862_v23 = vpack.c.bf16 %v1671_v58, %v1670_v15  ;;  %v1895_v12 = vpack.c.bf16 %v1694_v19, %v1693_v16  ;;  %v1865_v57 = vpack.c.bf16 %v1673_v9, %v1672_v24  ;;  %v1675_v42 = vld [vmem:[%s3020_s3 + $0x228] sm:$0xff]  ;;  %v1698_v36 = vld [vmem:[%s3020_s3 + $0x2d8] sm:$0xff]  ;;  %v1676_v41 = vld [vmem:[%s3020_s3 + $0x230] sm:$0xff] }
 0x1a6   :  { %v1284_v54 = vsel %vm1050_vm12, %v1274_v38, %v1283_v48  ;;  %v1410_v31 = vsel %vm117_vm2, %v1274_v38, %v1409_v17  ;;  %v1898_v6 = vpack.c.bf16 %v1696_v21, %v1695_v32  ;;  %v1262_v38 = vrot.slane %v933_v26, %v2387_v20  ;;  %v1677_v29 = vld [vmem:[%s3020_s3 + $0x238] sm:$0xff]  ;;  %v1700_v26 = vld [vmem:[%s3020_s3 + $0x2e8] sm:$0xff]  ;;  %v1499_v39 = vld [vmem:[%s3022_s5 + $0x20] sm:$0xff] }
 0x1a7   :  { %1678 = vmatprep.mubr.msk.f32.mxu1 %vm1058_vm13, %v1284_v54  ;;  %v1401_v28 = vrot.slane %v940_v55, %v2634_v52  ;;  %v1687_v52 = vld [vmem:[%s3020_s3 + $0x280] sm:$0xff]  ;;  %v1275_v48 = vsel %vm1044_vm10, %v2692_v61, %v2704_v50  ;;  %v1389_v54 = vrot.slane %v934_v44, %v2387_v20  ;;  %v1871_v17 = vpack.c.bf16 %v1677_v29, %v1676_v41 }
 0x1a8   :  { %1848 = vmatpush1.bf16.msra.mxu1 %v1847_v27  ;;  %1881 = vmatpush1.bf16.msra.mxu0 %v1880_v40  ;;  %v1886_v1 = vpack.c.bf16 %v1688_v2, %v1687_v52  ;;  %v1868_v27 = vpack.c.bf16 %v1675_v42, %v1674_v33  ;;  %v1901_v40 = vpack.c.bf16 %v1698_v36, %v1697_v59  ;;  %v1496_v52 = vld [vmem:[%s3022_s5 + $0x8] sm:$0xff]  ;;  %v1704_v51 = vld [vmem:[%s3023_s4] ss:$0 sm:$0xff] }
 0x1a9   :  { %1849 = vmatprep.subr.bf16.mxu1 %v1946_v45  ;;  %v1411_v46 = vsel %vm1050_vm12, %v1401_v28, %v1410_v31  ;;  %1882 = vmatprep.subr.bf16.mxu0 %v1946_v45  ;;  %v1276_v50 = vsel %vm115_vm1, %v1262_v38, %v1275_v48  ;;  %v1904_v18 = vpack.c.bf16 %v1700_v26, %v1699_v5  ;;  %v1701_v31 = vld [vmem:[%s3020_s3 + $0x2f0] sm:$0xff] }
 0x1aa   :  { %1703 = vmatprep.mubr.msk.f32.mxu0 %vm1058_vm13, %v1411_v46  ;;  %v1402_v53 = vsel %vm1044_vm10, %v1262_v38, %v2692_v61  ;;  %v1270_v44 = vrot.slane %v939_v22, %v2387_v20  ;;  %v1277_v28 = vsel %vm1047_vm11, %v2714_v34, %v1276_v50  ;;  %v1397_v7 = vrot.slane %v940_v55, %v2387_v20  ;;  %v1495_v46 = vld [vmem:[%s3022_s5] sm:$0xff]  ;;  %v1497_v20 = vld [vmem:[%s3022_s5 + $0x10] sm:$0xff] }
 0x1ab   :  { %v1403_v61 = vsel %vm115_vm1, %v1389_v54, %v1402_v53  ;;  %v1910_v2 = vpack.c.bf16 %v1496_v52, %v1495_v46 }
 0x1ac   :  { %1851 = vmatpush1.bf16.msra.mxu1 %v1850_v35  ;;  %1884 = vmatpush1.bf16.msra.mxu0 %v1883_v37  ;;  %v1907_v35 = vpack.c.bf16 %v1702_v62, %v1701_v31  ;;  %v1278_v37 = vsel %vm117_vm2, %v2723_v60, %v1277_v28  ;;  %v1404_v34 = vsel %vm1047_vm11, %v2723_v60, %v1403_v61  ;;  %v1498_v60 = vld [vmem:[%s3022_s5 + $0x18] sm:$0xff] }
 0x1ad   :  { %1852 = vmatprep.subr.bf16.mxu1 %v1946_v45  ;;  %1885 = vmatprep.subr.bf16.mxu0 %v1946_v45  ;;  %v1279_v43 = vsel %vm1050_vm12, %v1270_v44, %v1278_v37  ;;  %v1405_v22 = vsel %vm117_vm2, %v1270_v44, %v1404_v34  ;;  %v1913_v55 = vpack.c.bf16 %v1498_v60, %v1497_v20 }
 0x1ae   :  { %v1406_v63 = vsel %vm1050_vm12, %v1397_v7, %v1405_v22 }
 0x1b0   :  { %1854 = vmatpush1.bf16.msra.mxu1 %v1853_v0  ;;  %1887 = vmatpush1.bf16.msra.mxu0 %v1886_v1  ;;  %v1500_v0 = vld [vmem:[%s3022_s5 + $0x28] sm:$0xff] }
 0x1b1   :  { %1855 = vmatprep.subr.bf16.mxu1 %v1946_v45  ;;  %1888 = vmatprep.subr.bf16.mxu0 %v1946_v45  ;;  %v1916_v1 = vpack.c.bf16 %v1500_v0, %v1499_v39 }
 0x1b4   :  { %1857 = vmatpush1.bf16.msra.mxu1 %v1856_v56  ;;  %1890 = vmatpush1.bf16.msra.mxu0 %v1889_v8 }
 0x1b5   :  { %1858 = vmatprep.subr.bf16.mxu1 %v1946_v45  ;;  %1891 = vmatprep.subr.bf16.mxu0 %v1946_v45 }
 0x1b8   :  { %1860 = vmatpush1.bf16.msra.mxu1 %v1859_v13  ;;  %1893 = vmatpush1.bf16.msra.mxu0 %v1892_v14 }
 0x1b9   :  { %1861 = vmatprep.subr.bf16.mxu1 %v1946_v45  ;;  %1894 = vmatprep.subr.bf16.mxu0 %v1946_v45 }
 0x1bc   :  { %1863 = vmatpush1.bf16.msra.mxu1 %v1862_v23  ;;  %1896 = vmatpush1.bf16.msra.mxu0 %v1895_v12 }
 0x1bd   :  { %1864 = vmatprep.subr.bf16.mxu1 %v1946_v45  ;;  %1897 = vmatprep.subr.bf16.mxu0 %v1946_v45 }
 0x1c0   :  { %1866 = vmatpush1.bf16.msra.mxu1 %v1865_v57  ;;  %1899 = vmatpush1.bf16.msra.mxu0 %v1898_v6 }
 0x1c1   :  { %1867 = vmatprep.subr.bf16.mxu1 %v1946_v45  ;;  %1900 = vmatprep.subr.bf16.mxu0 %v1946_v45 }
 0x1c4   :  { %1869 = vmatpush1.bf16.msra.mxu1 %v1868_v27  ;;  %1902 = vmatpush1.bf16.msra.mxu0 %v1901_v40 }
 0x1c5   :  { %1870 = vmatprep.subr.bf16.mxu1 %v1946_v45  ;;  %1903 = vmatprep.subr.bf16.mxu0 %v1946_v45 }
 0x1c8   :  { %1872 = vmatpush1.bf16.msra.mxu1 %v1871_v17  ;;  %1905 = vmatpush1.bf16.msra.mxu0 %v1904_v18 }
 0x1c9   :  { %1909 = vmatprep.subr.bf16.mxu1 %v1946_v45  ;;  %1906 = vmatprep.subr.bf16.mxu0 %v1946_v45 }
 0x1cb   :  { %1353 = vmatmul.mubr.f32.vlgmr.msra.gmra.mrb[10].mxu1 %v1279_v43 }
 0x1cc   :  { %1908 = vmatpush1.bf16.msra.mxu0 %v1907_v35  ;;  %1911 = vmatpush3.bf16.msra.mxu1 %v1910_v2 }
 0x1cd   :  { %1912 = vmatprep.subr.bf16.mxu1 %v1946_v45  ;;  %1726 = vmatprep.mubr.msk.f32.mxu1 %vm1949_vm14, %v1944_v4 }
 0x1cf   :  { %1480 = vmatmul.mubr.f32.vlgmr.msra.gmra.mrb[10].mxu0 %v1406_v63 }
 0x1d0   :  { %1914 = vmatpush3.bf16.msra.mxu1 %v1913_v55 }
 0x1d1   :  { %1915 = vmatprep.subr.bf16.mxu1 %v1946_v45  ;;  %v1705_v45 = vld [vmem:[%s3024_s6] ss:$0 sm:$0xff] }
 0x1d4   :  { %1917 = vmatpush3.bf16.msra.mxu1 %v1916_v1 }
 0x26e   :  { %v1127_v3 = vpop.f32.mrb[8].mxu1 }
 0x26f   :  { %v1129_v25 = vpop.f32.mrb[9].mxu1 }
 0x272   :  { %v1228_v49 = vpop.f32.mrb[8].mxu0 }
 0x273   :  { %v1229_v11 = vadd.f32 %v1228_v49, %v1127_v3  ;;  %v1230_v56 = vpop.f32.mrb[9].mxu0 }
 0x29e   :  { %v1354_v8 = vpop.f32.mrb[10].mxu1 }
 0x29f   :  { %v1358_v10 = vadd.f32 %v1354_v8, %v1229_v11  ;;  %v1356_v47 = vpop.f32.mrb[11].mxu1 }
 0x2a2   :  { %v1481_v30 = vpop.f32.mrb[10].mxu0 }
 0x2a3   :  { %v1485_v13 = vadd.f32 %v1481_v30, %v1358_v10  ;;  %v1483_v4 = vpop.f32.mrb[11].mxu0 }
 0x2a5   :  { %v1493_v14 = vadd.f32 %v1704_v51, %v1485_v13 }
 0x2a7   :  { %v1494_v15 = vmax.f32 %v1493_v14, 0.0 }
 0x2a9   :  { %1727 = vmatmul.mubr.msk.f32.vlgmr.msra.gmra.mrb[12].mxu1 %vm237_vm3, %v1494_v15 }
 0x37c   :  { %v1577_v58 = vpop.f32.mrb[12].mxu1 }
 0x37d   :  { %v1578_v16 = vadd.f32 %v1705_v45, %v1577_v58  ;;  %v1728_v19 = vpop.f32.mrb[13].mxu1 }
 0x37f   :  { %1582 = vst.msk [vmem:[%s3025_s7] sm:$0x3f] %vm1581_vm15, %v1578_v16 }

</bundles_post_ra>
